<compile_context>
chip_gen: v7x
topology: tpu7x:2x2x1
jax: 0.10.0
libtpu: 0.0.40
codegen_flags: <defaults>
</compile_context>

<pallas_src>
import functools

import jax
import jax.numpy as jnp
from jax.experimental import pallas as pl
from jax.experimental.pallas import tpu as pltpu

IN_FEATURES = 3 * 40 * 40     # 4800
K_PAD = 4864                  # 38 * 128, lane-aligned contraction dimension
NUM_CLASSES = 10
OUT_PAD = 128                 # lane-dense padded class dimension
NEG = -1.0e30                 # "minus infinity" for padded class logits


def _round_up(n, m):
    return ((n + m - 1) // m) * m


def _activation(x, act):
    # act: 0 -> sigmoid, 1 -> tanh, 2 -> relu (static Python int)
    if act == 0:
        return jax.nn.sigmoid(x)
    elif act == 1:
        return jnp.tanh(x)
    elif act == 2:
        return jnp.maximum(x, 0.0)
    return x


def _make_mlp_kernel(n_layers, act):
    def kernel(x_ref, *refs):
        # refs = (w0, b0, w1, b1, ..., out)
        out_ref = refs[-1]
        param_refs = refs[:-1]

        h = x_ref[...]                              # (TB, K_PAD) bf16
        for li in range(n_layers):
            w = param_refs[2 * li][...]             # (in_pad, out_pad) bf16
            b = param_refs[2 * li + 1][...]         # (1, out_pad)      f32
            # MXU matmul with f32 accumulation + bias broadcast.
            h = jnp.dot(h, w, preferred_element_type=jnp.float32) + b
            if li < n_layers - 1:
                h = _activation(h, act).astype(jnp.bfloat16)

        # Numerically stable log_softmax over the (padded) class dimension.
        # Padded classes carry -1e30 logits, so exp() underflows to 0 and the
        # real-class results are identical to an unpadded log_softmax.
        m = jnp.max(h, axis=-1, keepdims=True)
        s = h - m
        lse = jnp.log(jnp.sum(jnp.exp(s), axis=-1, keepdims=True))
        out_ref[...] = (s - lse).astype(out_ref.dtype)

    return kernel


def init_params(key, layer_size, hidden_layer):
    """Deterministic parameter init. Weights stored as (in, out); biases as (1, out)."""
    if hidden_layer == 0:
        dims = [(IN_FEATURES, NUM_CLASSES)]
    elif hidden_layer == 1:
        dims = [(IN_FEATURES, layer_size), (layer_size, NUM_CLASSES)]
    elif hidden_layer == 2:
        dims = [(IN_FEATURES, layer_size), (layer_size, layer_size),
                (layer_size, NUM_CLASSES)]
    else:
        raise ValueError("hidden_layer must be 0, 1, or 2")

    params = []
    for i, (fan_in, fan_out) in enumerate(dims):
        kw, kb = jax.random.split(jax.random.fold_in(key, i))
        bound = 1.0 / (fan_in ** 0.5)  # matches nn.Linear default uniform init range
        w = jax.random.uniform(kw, (fan_in, fan_out), jnp.float32, -bound, bound)
        b = jax.random.uniform(kb, (1, fan_out), jnp.float32, -bound, bound)
        params.append((w, b))
    return params


@functools.partial(jax.jit, static_argnames=("hidden_layer", "act"))
def mlp_forward(x, params, hidden_layer, act):
    """x: (B, 3, 40, 40) float32 -> (B, 10) float32 log-probabilities."""
    B = x.shape[0]
    n_layers = hidden_layer + 1
    assert len(params) == n_layers

    # --- operand prep: bf16, lane-aligned K / widths, sublane-aligned batch ---
    x_flat = x.reshape(B, -1).astype(jnp.bfloat16)        # (B, 4800)

    # Batch tile: 128 rows for large batches, otherwise smallest multiple of 16
    # (bf16 sublane packing) covering B.
    TB = 128 if B >= 128 else max(16, _round_up(B, 16))
    B_pad = _round_up(B, TB)
    x_flat = jnp.pad(x_flat, ((0, B_pad - B), (0, K_PAD - IN_FEATURES)))

    # Pad every layer to 128-lane widths. Zero weight rows/cols keep the math
    # exact; the final bias is padded with -1e30 so padded logits drop out of
    # the log_softmax.
    prepped = []
    in_pad_prev = K_PAD
    for li, (w, b) in enumerate(params):
        fan_in, fan_out = w.shape
        is_last = li == n_layers - 1
        out_pad = OUT_PAD if is_last else _round_up(fan_out, 128)
        w = jnp.pad(w.astype(jnp.bfloat16),
                    ((0, in_pad_prev - fan_in), (0, out_pad - fan_out)))
        b = jnp.pad(b.astype(jnp.float32),
                    ((0, 0), (0, out_pad - fan_out)),
                    constant_values=(NEG if is_last else 0.0))
        prepped.append((w, b))
        in_pad_prev = out_pad

    flat_params = []
    for w, b in prepped:
        flat_params.extend([w, b])

    grid = (B_pad // TB,)

    # x / out stream per batch tile; weights & biases use a constant block
    # index so they are fetched once and stay resident in VMEM.
    in_specs = [pl.BlockSpec((TB, K_PAD), lambda i: (i, 0))]
    for w, b in prepped:
        in_specs.append(pl.BlockSpec(w.shape, lambda i: (0, 0)))
        in_specs.append(pl.BlockSpec(b.shape, lambda i: (0, 0)))
    out_spec = pl.BlockSpec((TB, OUT_PAD), lambda i: (i, 0))

    # --- advisory cost estimate + VMEM budget ---
    flops = 2 * B_pad * sum(w.shape[0] * w.shape[1] for w, _ in prepped)
    hidden_units = sum(w.shape[1] for w, _ in prepped[:-1])
    transcendentals = B_pad * (OUT_PAD + (hidden_units if act in (0, 1) else 0))
    param_bytes = sum(int(w.size) * w.dtype.itemsize + int(b.size) * b.dtype.itemsize
                      for w, b in prepped)
    bytes_accessed = (int(x_flat.size) * x_flat.dtype.itemsize
                      + param_bytes + B_pad * OUT_PAD * 4)

    tile_bytes = TB * K_PAD * 2 + TB * OUT_PAD * 4
    # Cap at 64 MiB: safe on v7x's smaller physical VMEM, plenty for v5e/v6e.
    vmem_limit = int(min(64 * 2**20,
                         max(32 * 2**20, param_bytes + 4 * tile_bytes + (16 << 20))))

    kernel = _make_mlp_kernel(n_layers, act)
    out = pl.pallas_call(
        kernel,
        out_shape=jax.ShapeDtypeStruct((B_pad, OUT_PAD), jnp.float32),
        grid=grid,
        in_specs=in_specs,
        out_specs=out_spec,
        compiler_params=pltpu.CompilerParams(
            dimension_semantics=("parallel",),
            vmem_limit_bytes=vmem_limit,
        ),
        cost_estimate=pl.CostEstimate(
            flops=flops,
            transcendentals=transcendentals,
            bytes_accessed=bytes_accessed,
        ),
    )(x_flat, *flat_params)

    return out[:B, :NUM_CLASSES]


if __name__ == "__main__":
    key = jax.random.PRNGKey(0)
    kx, kp = jax.random.split(key)

    # Small, forward-consistent config: batch=2, layer_size=32, 2 hidden layers, ReLU.
    B = 2
    layer_size, hidden_layer, act = 32, 2, 2

    x = jax.random.normal(kx, (B, 3, 40, 40), dtype=jnp.float32)
    params = init_params(kp, layer_size, hidden_layer)

    out = mlp_forward(x, params, hidden_layer, act)
    out = jax.block_until_ready(out)

    # Pure-JAX reference mirroring the kernel's bf16-weight / f32-accumulate numerics.
    h = x.reshape(B, -1).astype(jnp.bfloat16)
    for li, (w, b) in enumerate(params):
        h = jnp.dot(h, w.astype(jnp.bfloat16),
                    preferred_element_type=jnp.float32) + b
        if li < len(params) - 1:
            h = _activation(h, act).astype(jnp.bfloat16)
    ref = jax.nn.log_softmax(h.astype(jnp.float32), axis=-1)

    assert out.shape == (B, NUM_CLASSES)
    assert jnp.allclose(out, ref, atol=2e-2, rtol=2e-2), "mismatch vs reference"
    # log-softmax rows must exponentiate-sum to 1
    assert jnp.allclose(jnp.sum(jnp.exp(out), axis=-1), 1.0, atol=1e-4)

    print("KERNEL_OK")
</pallas_src>

<mosaic_0001>
module attributes {stable_mosaic.version = 11 : i64} {
  func.func @kernel(%arg0: i32, %arg1: memref<16x4864xbf16, #tpu.memory_space<vmem>>, %arg2: memref<4864x128xbf16, #tpu.memory_space<vmem>>, %arg3: memref<1x128xf32, #tpu.memory_space<vmem>>, %arg4: memref<128x128xbf16, #tpu.memory_space<vmem>>, %arg5: memref<1x128xf32, #tpu.memory_space<vmem>>, %arg6: memref<128x128xbf16, #tpu.memory_space<vmem>>, %arg7: memref<1x128xf32, #tpu.memory_space<vmem>>, %arg8: memref<16x128xf32, #tpu.memory_space<vmem>>) attributes {dimension_semantics = [#tpu.dimension_semantics<parallel>], iteration_bounds = array<i64: 1>, scalar_prefetch = 0 : i64, scratch_operands = 0 : i64, tpu.core_type = #tpu.core_type<tc>, window_params = [{transform_indices = @transform_0, window_bounds = array<i64: 16, 4864>}, {pipeline_mode = #tpu.pipeline_mode<synchronous>, transform_indices = @transform_1, window_bounds = array<i64: 4864, 128>}, {pipeline_mode = #tpu.pipeline_mode<synchronous>, transform_indices = @transform_2, window_bounds = array<i64: 1, 128>}, {pipeline_mode = #tpu.pipeline_mode<synchronous>, transform_indices = @transform_3, window_bounds = array<i64: 128, 128>}, {pipeline_mode = #tpu.pipeline_mode<synchronous>, transform_indices = @transform_4, window_bounds = array<i64: 1, 128>}, {pipeline_mode = #tpu.pipeline_mode<synchronous>, transform_indices = @transform_5, window_bounds = array<i64: 128, 128>}, {pipeline_mode = #tpu.pipeline_mode<synchronous>, transform_indices = @transform_6, window_bounds = array<i64: 1, 128>}, {transform_indices = @transform_7, window_bounds = array<i64: 16, 128>}]} {
    %c0 = arith.constant 0 : index
    %c0_0 = arith.constant 0 : index
    %0 = vector.load %arg1[%c0, %c0_0] : memref<16x4864xbf16, #tpu.memory_space<vmem>>, vector<16x4864xbf16>
    %c0_1 = arith.constant 0 : index
    %c0_2 = arith.constant 0 : index
    %1 = vector.load %arg2[%c0_1, %c0_2] : memref<4864x128xbf16, #tpu.memory_space<vmem>>, vector<4864x128xbf16>
    %c0_3 = arith.constant 0 : index
    %c0_4 = arith.constant 0 : index
    %2 = vector.load %arg3[%c0_3, %c0_4] : memref<1x128xf32, #tpu.memory_space<vmem>>, vector<1x128xf32>
    %cst = arith.constant dense<0.000000e+00> : vector<16x128xf32>
    %3 = tpu.matmul %0, %1, %cst {dimension_numbers = #tpu.dot_dimension_numbers<[1], [0], [0], [1], [0, 0, 1, 1], [], []>} : vector<16x4864xbf16>, vector<4864x128xbf16>, vector<16x128xf32> -> vector<16x128xf32>
    %4 = vector.broadcast %2 : vector<1x128xf32> to vector<16x128xf32>
    %5 = arith.addf %3, %4 : vector<16x128xf32>
    %cst_5 = arith.constant 0.000000e+00 : f32
    %6 = vector.broadcast %cst_5 : f32 to vector<16x128xf32>
    %7 = arith.maximumf %5, %6 : vector<16x128xf32>
    %8 = arith.truncf %7 : vector<16x128xf32> to vector<16x128xbf16>
    %c0_6 = arith.constant 0 : index
    %c0_7 = arith.constant 0 : index
    %9 = vector.load %arg4[%c0_6, %c0_7] : memref<128x128xbf16, #tpu.memory_space<vmem>>, vector<128x128xbf16>
    %c0_8 = arith.constant 0 : index
    %c0_9 = arith.constant 0 : index
    %10 = vector.load %arg5[%c0_8, %c0_9] : memref<1x128xf32, #tpu.memory_space<vmem>>, vector<1x128xf32>
    %cst_10 = arith.constant dense<0.000000e+00> : vector<16x128xf32>
    %11 = tpu.matmul %8, %9, %cst_10 {dimension_numbers = #tpu.dot_dimension_numbers<[1], [0], [0], [1], [0, 0, 1, 1], [], []>} : vector<16x128xbf16>, vector<128x128xbf16>, vector<16x128xf32> -> vector<16x128xf32>
    %12 = vector.broadcast %10 : vector<1x128xf32> to vector<16x128xf32>
    %13 = arith.addf %11, %12 : vector<16x128xf32>
    %cst_11 = arith.constant 0.000000e+00 : f32
    %14 = vector.broadcast %cst_11 : f32 to vector<16x128xf32>
    %15 = arith.maximumf %13, %14 : vector<16x128xf32>
    %16 = arith.truncf %15 : vector<16x128xf32> to vector<16x128xbf16>
    %c0_12 = arith.constant 0 : index
    %c0_13 = arith.constant 0 : index
    %17 = vector.load %arg6[%c0_12, %c0_13] : memref<128x128xbf16, #tpu.memory_space<vmem>>, vector<128x128xbf16>
    %c0_14 = arith.constant 0 : index
    %c0_15 = arith.constant 0 : index
    %18 = vector.load %arg7[%c0_14, %c0_15] : memref<1x128xf32, #tpu.memory_space<vmem>>, vector<1x128xf32>
    %cst_16 = arith.constant dense<0.000000e+00> : vector<16x128xf32>
    %19 = tpu.matmul %16, %17, %cst_16 {dimension_numbers = #tpu.dot_dimension_numbers<[1], [0], [0], [1], [0, 0, 1, 1], [], []>} : vector<16x128xbf16>, vector<128x128xbf16>, vector<16x128xf32> -> vector<16x128xf32>
    %20 = vector.broadcast %18 : vector<1x128xf32> to vector<16x128xf32>
    %21 = arith.addf %19, %20 : vector<16x128xf32>
    %cst_17 = arith.constant dense<0xFF800000> : vector<16xf32>
    %22 = vector.multi_reduction <maximumf>, %21, %cst_17 [1] : vector<16x128xf32> to vector<16xf32>
    %23 = vector.shape_cast %22 : vector<16xf32> to vector<16x1xf32>
    %24 = vector.broadcast %23 : vector<16x1xf32> to vector<16x128xf32>
    %25 = arith.subf %21, %24 : vector<16x128xf32>
    %26 = math.exp %25 : vector<16x128xf32>
    %cst_18 = arith.constant dense<0.000000e+00> : vector<16xf32>
    %27 = vector.multi_reduction <add>, %26, %cst_18 [1] : vector<16x128xf32> to vector<16xf32>
    %28 = vector.shape_cast %27 : vector<16xf32> to vector<16x1xf32>
    %29 = math.log %28 : vector<16x1xf32>
    %30 = vector.broadcast %29 : vector<16x1xf32> to vector<16x128xf32>
    %31 = arith.subf %25, %30 : vector<16x128xf32>
    %c0_19 = arith.constant 0 : index
    %c0_20 = arith.constant 0 : index
    %32 = vector.load %arg8[%c0_19, %c0_20] : memref<16x128xf32, #tpu.memory_space<vmem>>, vector<16x128xf32>
    tpu.vector_store %arg8[%c0_19, %c0_20], %31 {strides = array<i32>} : memref<16x128xf32, #tpu.memory_space<vmem>>, vector<16x128xf32>,
    return
  }
  func.func @transform_0(%arg0: i32) -> (i32, i32) {
    %c0_i32 = arith.constant 0 : i32
    %c0_i32_0 = arith.constant 0 : i32
    return %arg0, %c0_i32 : i32, i32
  }
  func.func @transform_1(%arg0: i32) -> (i32, i32) {
    %c0_i32 = arith.constant 0 : i32
    %c0_i32_0 = arith.constant 0 : i32
    %c0_i32_1 = arith.constant 0 : i32
    return %c0_i32, %c0_i32_0 : i32, i32
  }
  func.func @transform_2(%arg0: i32) -> (i32, i32) {
    %c0_i32 = arith.constant 0 : i32
    %c0_i32_0 = arith.constant 0 : i32
    %c0_i32_1 = arith.constant 0 : i32
    return %c0_i32, %c0_i32_0 : i32, i32
  }
  func.func @transform_3(%arg0: i32) -> (i32, i32) {
    %c0_i32 = arith.constant 0 : i32
    %c0_i32_0 = arith.constant 0 : i32
    %c0_i32_1 = arith.constant 0 : i32
    return %c0_i32, %c0_i32_0 : i32, i32
  }
  func.func @transform_4(%arg0: i32) -> (i32, i32) {
    %c0_i32 = arith.constant 0 : i32
    %c0_i32_0 = arith.constant 0 : i32
    %c0_i32_1 = arith.constant 0 : i32
    return %c0_i32, %c0_i32_0 : i32, i32
  }
  func.func @transform_5(%arg0: i32) -> (i32, i32) {
    %c0_i32 = arith.constant 0 : i32
    %c0_i32_0 = arith.constant 0 : i32
    %c0_i32_1 = arith.constant 0 : i32
    return %c0_i32, %c0_i32_0 : i32, i32
  }
  func.func @transform_6(%arg0: i32) -> (i32, i32) {
    %c0_i32 = arith.constant 0 : i32
    %c0_i32_0 = arith.constant 0 : i32
    %c0_i32_1 = arith.constant 0 : i32
    return %c0_i32, %c0_i32_0 : i32, i32
  }
  func.func @transform_7(%arg0: i32) -> (i32, i32) {
    %c0_i32 = arith.constant 0 : i32
    %c0_i32_0 = arith.constant 0 : i32
    return %arg0, %c0_i32 : i32, i32
  }
}

</mosaic_0001>

<bundles_post_ra>
// kernel: mlp_forward.1
= control target key start
LH: loop header
LB: loop body
LE: loop exit
PB: predicated region body
PF: predicated region fallthrough
CT: control target
= control target key end

     0   :  { %vm4954_vm0 = vmmov 0   ;;  %s6108_s1 = inlined_call_operand.vmem [shape: bf16[4864,128], index: 1, kind: input, shape index: {}]   ;;  %s6109_s0 = inlined_call_operand.vmem [shape: bf16[16,4864], index: 0, kind: input, shape index: {}]   ;;  %s6110_s2 = inlined_call_operand.vmem [shape: f32[1,128], index: 2, kind: input, shape index: {}]   ;;  %s6111_s3 = inlined_call_operand.vmem [shape: bf16[128,128], index: 3, kind: input, shape index: {}]   ;;  %s6112_s5 = inlined_call_operand.vmem [shape: bf16[128,128], index: 5, kind: input, shape index: {}]   ;;  %s6113_s4 = inlined_call_operand.vmem [shape: f32[1,128], index: 4, kind: input, shape index: {}]   ;;  %s6114_s6 = inlined_call_operand.vmem [shape: f32[1,128], index: 6, kind: input, shape index: {}]   ;;  %s6115_s7 = inlined_call_operand.vmem [shape: f32[16,128], index: 7, kind: output, shape index: {}]  }
   0x1   :  { %v4568_v0 = vld [vmem:[%s6108_s1 + $0x40] sm:$0xff]   ;;  %v4572_v4 = vld [vmem:[%s6108_s1 + $0x48] sm:$0xff]   ;;  %v4576_v8 = vld [vmem:[%s6108_s1 + $0x50] sm:$0xff]  }
   0x2   :  { %v4569_v1 = vld [vmem:[%s6108_s1] sm:$0xff]   ;;  %4090 = vmatprep.subr.bf16.mxu0 %v4568_v0  ;;  %v4573_v5 = vld [vmem:[%s6108_s1 + $0x8] sm:$0xff]   ;;  %v4577_v9 = vld [vmem:[%s6108_s1 + $0x10] sm:$0xff]  }
   0x3   :  { %v4570_v2 = vld [vmem:[%s6108_s1 + $0xc0] sm:$0xff]   ;;  %4091 = vmatpush3.bf16.msra.mxu0 %v4569_v1  ;;  %v4574_v6 = vld [vmem:[%s6108_s1 + $0xc8] sm:$0xff]   ;;  %v4578_v10 = vld [vmem:[%s6108_s1 + $0xd0] sm:$0xff]  }
   0x4   :  { %v4571_v3 = vld [vmem:[%s6108_s1 + $0x80] sm:$0xff]   ;;  %4112 = vmatprep.subr.bf16.mxu1 %v4570_v2  ;;  %4092 = vmatprep.subr.bf16.mxu0 %v4572_v4  ;;  %v4575_v7 = vld [vmem:[%s6108_s1 + $0x88] sm:$0xff]   ;;  %v4579_v11 = vld [vmem:[%s6108_s1 + $0x90] sm:$0xff]  }
   0x5   :  { %4113 = vmatpush3.bf16.msra.mxu1 %v4571_v3  ;;  %v4580_v12 = vld [vmem:[%s6108_s1 + $0x58] sm:$0xff]   ;;  %v4584_v16 = vld [vmem:[%s6108_s1 + $0x60] sm:$0xff]   ;;  %v4588_v20 = vld [vmem:[%s6108_s1 + $0x68] sm:$0xff]  }
   0x6   :  { %4114 = vmatprep.subr.bf16.mxu1 %v4574_v6  ;;  %v4581_v13 = vld [vmem:[%s6108_s1 + $0x18] sm:$0xff]   ;;  %v4585_v17 = vld [vmem:[%s6108_s1 + $0x20] sm:$0xff]   ;;  %v4589_v21 = vld [vmem:[%s6108_s1 + $0x28] sm:$0xff]  }
   0x7   :  { %4093 = vmatpush3.bf16.msra.mxu0 %v4573_v5  ;;  %v4582_v14 = vld [vmem:[%s6108_s1 + $0xd8] sm:$0xff]   ;;  %v4586_v18 = vld [vmem:[%s6108_s1 + $0xe0] sm:$0xff]   ;;  %v4590_v22 = vld [vmem:[%s6108_s1 + $0xe8] sm:$0xff]  }
   0x8   :  { %4094 = vmatprep.subr.bf16.mxu0 %v4576_v8  ;;  %v4583_v15 = vld [vmem:[%s6108_s1 + $0x98] sm:$0xff]   ;;  %v4587_v19 = vld [vmem:[%s6108_s1 + $0xa0] sm:$0xff]   ;;  %v4591_v23 = vld [vmem:[%s6108_s1 + $0xa8] sm:$0xff]  }
   0x9   :  { %4115 = vmatpush3.bf16.msra.mxu1 %v4575_v7  ;;  %v4592_v24 = vld [vmem:[%s6108_s1 + $0x70] sm:$0xff]   ;;  %v4596_v28 = vld [vmem:[%s6108_s1 + $0x78] sm:$0xff]   ;;  %v4603_v34 = vld [vmem:[%s6108_s1 + $0x140] sm:$0xff]  }
   0xa   :  { %4116 = vmatprep.subr.bf16.mxu1 %v4578_v10  ;;  %v4593_v25 = vld [vmem:[%s6108_s1 + $0x30] sm:$0xff]   ;;  %v4597_v29 = vld [vmem:[%s6108_s1 + $0x38] sm:$0xff]   ;;  %v4604_v35 = vld [vmem:[%s6109_s0 + $0x8] ss:$152 sps:$4 sm:$0xff]  }
   0xb   :  { %4095 = vmatpush3.bf16.msra.mxu0 %v4577_v9  ;;  %v4594_v26 = vld [vmem:[%s6108_s1 + $0xf0] sm:$0xff]   ;;  %v4598_v30 = vld [vmem:[%s6108_s1 + $0xf8] sm:$0xff]   ;;  %v4606_v36 = vld [vmem:[%s6109_s0 + $0xc] ss:$152 sps:$4 sm:$0xff]  }
   0xc   :  { %4096 = vmatprep.subr.bf16.mxu0 %v4580_v12  ;;  %v4595_v27 = vld [vmem:[%s6108_s1 + $0xb0] sm:$0xff]   ;;  %v4599_v31 = vld [vmem:[%s6109_s0] ss:$152 sps:$4 sm:$0xff]   ;;  %v4601_v32 = vld [vmem:[%s6109_s0 + $0x4] ss:$152 sps:$4 sm:$0xff]   ;;  %2767 = vmatprep.mubr.bf16.mxu1 %v4606_v36 }
   0xd   :  { %4117 = vmatpush3.bf16.msra.mxu1 %v4579_v11  ;;  %v4602_v33 = vld [vmem:[%s6108_s1 + $0xb8] sm:$0xff]   ;;  %2726 = vmatprep.mubr.bf16.mxu0 %v4601_v32  ;;  %v4607_v37 = vld [vmem:[%s6108_s1 + $0x100] sm:$0xff]   ;;  %v4610_v40 = vld [vmem:[%s6108_s1 + $0x148] sm:$0xff]  }
   0xe   :  { %4118 = vmatprep.subr.bf16.mxu1 %v4582_v14  ;;  %v4608_v38 = vld [vmem:[%s6108_s1 + $0x1c0] sm:$0xff]   ;;  %v4611_v41 = vld [vmem:[%s6108_s1 + $0x108] sm:$0xff]   ;;  %v4614_v44 = vld [vmem:[%s6108_s1 + $0x150] sm:$0xff]  }
   0xf   :  { %4097 = vmatpush3.bf16.msra.mxu0 %v4581_v13  ;;  %v4609_v39 = vld [vmem:[%s6108_s1 + $0x180] sm:$0xff]   ;;  %v4612_v42 = vld [vmem:[%s6108_s1 + $0x1c8] sm:$0xff]   ;;  %v4615_v45 = vld [vmem:[%s6108_s1 + $0x110] sm:$0xff]  }
  0x10   :  { %4098 = vmatprep.subr.bf16.mxu0 %v4584_v16  ;;  %v4613_v43 = vld [vmem:[%s6108_s1 + $0x188] sm:$0xff]   ;;  %v4616_v46 = vld [vmem:[%s6108_s1 + $0x1d0] sm:$0xff]   ;;  %v4618_v48 = vld [vmem:[%s6108_s1 + $0x158] sm:$0xff]  }
  0x11   :  { %4119 = vmatpush3.bf16.msra.mxu1 %v4583_v15  ;;  %v4617_v47 = vld [vmem:[%s6108_s1 + $0x190] sm:$0xff]   ;;  %v4619_v49 = vld [vmem:[%s6108_s1 + $0x118] sm:$0xff]   ;;  %v4622_v52 = vld [vmem:[%s6108_s1 + $0x160] sm:$0xff]  }
  0x12   :  { %4120 = vmatprep.subr.bf16.mxu1 %v4586_v18  ;;  %v4620_v50 = vld [vmem:[%s6108_s1 + $0x1d8] sm:$0xff]   ;;  %v4623_v53 = vld [vmem:[%s6108_s1 + $0x120] sm:$0xff]   ;;  %v4626_v56 = vld [vmem:[%s6108_s1 + $0x168] sm:$0xff]  }
  0x13   :  { %4099 = vmatpush3.bf16.msra.mxu0 %v4585_v17  ;;  %v4621_v51 = vld [vmem:[%s6108_s1 + $0x198] sm:$0xff]   ;;  %v4624_v54 = vld [vmem:[%s6108_s1 + $0x1e0] sm:$0xff]   ;;  %v4627_v57 = vld [vmem:[%s6108_s1 + $0x128] sm:$0xff]  }
  0x14   :  { %4100 = vmatprep.subr.bf16.mxu0 %v4588_v20  ;;  %v4625_v55 = vld [vmem:[%s6108_s1 + $0x1a0] sm:$0xff]   ;;  %v4628_v58 = vld [vmem:[%s6108_s1 + $0x1e8] sm:$0xff]   ;;  %v4630_v60 = vld [vmem:[%s6108_s1 + $0x170] sm:$0xff]  }
  0x15   :  { %4121 = vmatpush3.bf16.msra.mxu1 %v4587_v19  ;;  %v4629_v59 = vld [vmem:[%s6108_s1 + $0x1a8] sm:$0xff]   ;;  %v4631_v61 = vld [vmem:[%s6108_s1 + $0x130] sm:$0xff]   ;;  %v4634_v0 = vld [vmem:[%s6108_s1 + $0x178] sm:$0xff]  }
  0x16   :  { %4122 = vmatprep.subr.bf16.mxu1 %v4590_v22  ;;  %v4632_v62 = vld [vmem:[%s6108_s1 + $0x1f0] sm:$0xff]   ;;  %v4635_v1 = vld [vmem:[%s6108_s1 + $0x138] sm:$0xff]   ;;  %v4641_v6 = vld [vmem:[%s6108_s1 + $0x240] sm:$0xff]  }
  0x17   :  { %4101 = vmatpush3.bf16.msra.mxu0 %v4589_v21  ;;  %v4633_v63 = vld [vmem:[%s6108_s1 + $0x1b0] sm:$0xff]   ;;  %v4636_v2 = vld [vmem:[%s6108_s1 + $0x1f8] sm:$0xff]   ;;  %v4645_v9 = vld [vmem:[%s6108_s1 + $0x200] sm:$0xff]  }
  0x18   :  { %4102 = vmatprep.subr.bf16.mxu0 %v4592_v24  ;;  %v4637_v3 = vld [vmem:[%s6109_s0 + $0x10] ss:$152 sps:$4 sm:$0xff]   ;;  %v4639_v4 = vld [vmem:[%s6109_s0 + $0x14] ss:$152 sps:$4 sm:$0xff]   ;;  %v4640_v5 = vld [vmem:[%s6108_s1 + $0x1b8] sm:$0xff]  }
  0x19   :  { %4123 = vmatpush3.bf16.msra.mxu1 %v4591_v23  ;;  %v4642_v7 = vld [vmem:[%s6109_s0 + $0x18] ss:$152 sps:$4 sm:$0xff]   ;;  %v4644_v8 = vld [vmem:[%s6109_s0 + $0x1c] ss:$152 sps:$4 sm:$0xff]   ;;  %v4646_v10 = vld [vmem:[%s6108_s1 + $0x2c0] sm:$0xff]  }
  0x1a   :  { %4124 = vmatprep.subr.bf16.mxu1 %v4594_v26  ;;  %v4647_v11 = vld [vmem:[%s6108_s1 + $0x280] sm:$0xff]   ;;  %v4648_v12 = vld [vmem:[%s6108_s1 + $0x248] sm:$0xff]   ;;  %v4652_v16 = vld [vmem:[%s6108_s1 + $0x250] sm:$0xff]  }
  0x1b   :  { %4103 = vmatpush3.bf16.msra.mxu0 %v4593_v25  ;;  %v4649_v13 = vld [vmem:[%s6108_s1 + $0x208] sm:$0xff]   ;;  %v4653_v17 = vld [vmem:[%s6108_s1 + $0x210] sm:$0xff]   ;;  %v4656_v20 = vld [vmem:[%s6108_s1 + $0x258] sm:$0xff]  }
  0x1c   :  { %4104 = vmatprep.subr.bf16.mxu0 %v4596_v28  ;;  %v4650_v14 = vld [vmem:[%s6108_s1 + $0x2c8] sm:$0xff]   ;;  %v4654_v18 = vld [vmem:[%s6108_s1 + $0x2d0] sm:$0xff]   ;;  %v4657_v21 = vld [vmem:[%s6108_s1 + $0x218] sm:$0xff]  }
  0x1d   :  { %4125 = vmatpush3.bf16.msra.mxu1 %v4595_v27  ;;  %v4651_v15 = vld [vmem:[%s6108_s1 + $0x288] sm:$0xff]   ;;  %v4655_v19 = vld [vmem:[%s6108_s1 + $0x290] sm:$0xff]   ;;  %v4658_v22 = vld [vmem:[%s6108_s1 + $0x2d8] sm:$0xff]  }
  0x1e   :  { %4126 = vmatprep.subr.bf16.mxu1 %v4598_v30  ;;  %v4659_v23 = vld [vmem:[%s6108_s1 + $0x298] sm:$0xff]   ;;  %v4660_v24 = vld [vmem:[%s6108_s1 + $0x260] sm:$0xff]   ;;  %v4664_v28 = vld [vmem:[%s6108_s1 + $0x268] sm:$0xff]  }
  0x1f   :  { %4105 = vmatpush3.bf16.msra.mxu0 %v4597_v29  ;;  %v4661_v25 = vld [vmem:[%s6108_s1 + $0x220] sm:$0xff]   ;;  %v4665_v29 = vld [vmem:[%s6108_s1 + $0x228] sm:$0xff]   ;;  %v4668_v32 = vld [vmem:[%s6108_s1 + $0x270] sm:$0xff]  }
  0x20   :  { %4134 = vmatprep.subr.bf16.mxu0 %v4603_v34  ;;  %v4662_v26 = vld [vmem:[%s6108_s1 + $0x2e0] sm:$0xff]   ;;  %v4666_v30 = vld [vmem:[%s6108_s1 + $0x2e8] sm:$0xff]   ;;  %v4670_v34 = vld [vmem:[%s6108_s1 + $0x2f0] sm:$0xff]  }
  0x21   :  { %4127 = vmatpush3.bf16.msra.mxu1 %v4602_v33  ;;  %v4663_v27 = vld [vmem:[%s6108_s1 + $0x2a0] sm:$0xff]   ;;  %v4669_v33 = vld [vmem:[%s6108_s1 + $0x230] sm:$0xff]   ;;  %v4672_v36 = vld [vmem:[%s6108_s1 + $0x278] sm:$0xff]  }
  0x22   :  { %2727 = vmatmul.mubr.bf16.vlgmr.msra.gmra.mrb[0].mxu0 %v4599_v31  ;;  %4156 = vmatprep.subr.bf16.mxu1 %v4608_v38  ;;  %v4667_v31 = vld [vmem:[%s6108_s1 + $0x2a8] sm:$0xff]   ;;  %v4674_v38 = vld [vmem:[%s6108_s1 + $0x2f8] sm:$0xff]  }
  0x23   :  { %4135 = vmatpush3.bf16.msra.mxu0 %v4607_v37  ;;  %2808 = vmatprep.mubr.bf16.mxu0 %v4639_v4  ;;  %v4673_v37 = vld [vmem:[%s6108_s1 + $0x238] sm:$0xff]   ;;  %v4706_v4 = vld [vmem:[%s6108_s1 + $0x370] sm:$0xff]  }
  0x24   :  { %2768 = vmatmul.mubr.bf16.vlgmr.msra.gmra.mrb[0].mxu1 %v4604_v35  ;;  %4136 = vmatprep.subr.bf16.mxu0 %v4610_v40  ;;  %v4671_v35 = vld [vmem:[%s6108_s1 + $0x2b0] sm:$0xff]   ;;  %v4677_v40 = vld [vmem:[%s6109_s0 + $0x24] ss:$152 sps:$4 sm:$0xff]  }
  0x25   :  { %4157 = vmatpush3.bf16.msra.mxu1 %v4609_v39  ;;  %2849 = vmatprep.mubr.bf16.mxu1 %v4644_v8  ;;  %v4675_v39 = vld [vmem:[%s6109_s0 + $0x20] ss:$152 sps:$4 sm:$0xff]  }
  0x26   :  { %4158 = vmatprep.subr.bf16.mxu1 %v4612_v42  ;;  %v4679_v42 = vld [vmem:[%s6108_s1 + $0x340] sm:$0xff]   ;;  %v4710_v8 = vld [vmem:[%s6108_s1 + $0x378] sm:$0xff]  }
  0x27   :  { %4137 = vmatpush3.bf16.msra.mxu0 %v4611_v41  ;;  %v4678_v41 = vld [vmem:[%s6108_s1 + $0x2b8] sm:$0xff]  }
  0x28   :  { %4138 = vmatprep.subr.bf16.mxu0 %v4614_v44  ;;  %v4682_v44 = vld [vmem:[%s6109_s0 + $0x2c] ss:$152 sps:$4 sm:$0xff]  }
  0x29   :  { %4159 = vmatpush3.bf16.msra.mxu1 %v4613_v43  ;;  %v4680_v43 = vld [vmem:[%s6109_s0 + $0x28] ss:$152 sps:$4 sm:$0xff]  }
  0x2a   :  { %4160 = vmatprep.subr.bf16.mxu1 %v4616_v46  ;;  %v4684_v46 = vld [vmem:[%s6108_s1 + $0x3c0] sm:$0xff]  }
  0x2b   :  { %4139 = vmatpush3.bf16.msra.mxu0 %v4615_v45  ;;  %v4683_v45 = vld [vmem:[%s6108_s1 + $0x300] sm:$0xff]  }
  0x2c   :  { %4140 = vmatprep.subr.bf16.mxu0 %v4618_v48  ;;  %v4686_v48 = vld [vmem:[%s6108_s1 + $0x348] sm:$0xff]  }
  0x2d   :  { %4161 = vmatpush3.bf16.msra.mxu1 %v4617_v47  ;;  %v4685_v47 = vld [vmem:[%s6108_s1 + $0x380] sm:$0xff]  }
  0x2e   :  { %4162 = vmatprep.subr.bf16.mxu1 %v4620_v50  ;;  %v4688_v50 = vld [vmem:[%s6108_s1 + $0x3c8] sm:$0xff]  }
  0x2f   :  { %4141 = vmatpush3.bf16.msra.mxu0 %v4619_v49  ;;  %v4687_v49 = vld [vmem:[%s6108_s1 + $0x308] sm:$0xff]  }
  0x30   :  { %4142 = vmatprep.subr.bf16.mxu0 %v4622_v52  ;;  %v4690_v52 = vld [vmem:[%s6108_s1 + $0x350] sm:$0xff]  }
  0x31   :  { %4163 = vmatpush3.bf16.msra.mxu1 %v4621_v51  ;;  %v4689_v51 = vld [vmem:[%s6108_s1 + $0x388] sm:$0xff]  }
  0x32   :  { %4164 = vmatprep.subr.bf16.mxu1 %v4624_v54  ;;  %v4692_v54 = vld [vmem:[%s6108_s1 + $0x3d0] sm:$0xff]  }
  0x33   :  { %4143 = vmatpush3.bf16.msra.mxu0 %v4623_v53  ;;  %v4691_v53 = vld [vmem:[%s6108_s1 + $0x310] sm:$0xff]  }
  0x34   :  { %4144 = vmatprep.subr.bf16.mxu0 %v4626_v56  ;;  %v4694_v56 = vld [vmem:[%s6108_s1 + $0x358] sm:$0xff]  }
  0x35   :  { %4165 = vmatpush3.bf16.msra.mxu1 %v4625_v55  ;;  %v4693_v55 = vld [vmem:[%s6108_s1 + $0x390] sm:$0xff]  }
  0x36   :  { %4166 = vmatprep.subr.bf16.mxu1 %v4628_v58  ;;  %v4696_v58 = vld [vmem:[%s6108_s1 + $0x3d8] sm:$0xff]  }
  0x37   :  { %4145 = vmatpush3.bf16.msra.mxu0 %v4627_v57  ;;  %v4695_v57 = vld [vmem:[%s6108_s1 + $0x318] sm:$0xff]  }
  0x38   :  { %4146 = vmatprep.subr.bf16.mxu0 %v4630_v60  ;;  %v4698_v60 = vld [vmem:[%s6108_s1 + $0x360] sm:$0xff]  }
  0x39   :  { %4167 = vmatpush3.bf16.msra.mxu1 %v4629_v59  ;;  %v4697_v59 = vld [vmem:[%s6108_s1 + $0x398] sm:$0xff]  }
  0x3a   :  { %4168 = vmatprep.subr.bf16.mxu1 %v4632_v62  ;;  %v4700_v62 = vld [vmem:[%s6108_s1 + $0x3e0] sm:$0xff]  }
  0x3b   :  { %4147 = vmatpush3.bf16.msra.mxu0 %v4631_v61  ;;  %v4699_v61 = vld [vmem:[%s6108_s1 + $0x320] sm:$0xff]  }
  0x3c   :  { %4148 = vmatprep.subr.bf16.mxu0 %v4634_v0  ;;  %v4702_v0 = vld [vmem:[%s6108_s1 + $0x368] sm:$0xff]  }
  0x3d   :  { %4169 = vmatpush3.bf16.msra.mxu1 %v4633_v63  ;;  %v4701_v63 = vld [vmem:[%s6108_s1 + $0x3a0] sm:$0xff]  }
  0x3e   :  { %4170 = vmatprep.subr.bf16.mxu1 %v4636_v2  ;;  %v4704_v2 = vld [vmem:[%s6108_s1 + $0x3e8] sm:$0xff]  }
  0x3f   :  { %4149 = vmatpush3.bf16.msra.mxu0 %v4635_v1  ;;  %v4703_v1 = vld [vmem:[%s6108_s1 + $0x328] sm:$0xff]  }
  0x40   :  { %4178 = vmatprep.subr.bf16.mxu0 %v4641_v6  ;;  %v4708_v6 = vld [vmem:[%s6108_s1 + $0x3f0] sm:$0xff]  }
  0x41   :  { %4171 = vmatpush3.bf16.msra.mxu1 %v4640_v5  ;;  %v4707_v5 = vld [vmem:[%s6108_s1 + $0x330] sm:$0xff]  }
  0x42   :  { %2809 = vmatmul.mubr.bf16.vlgmr.msra.gmra.mrb[4].mxu0 %v4637_v3  ;;  %4200 = vmatprep.subr.bf16.mxu1 %v4646_v10  ;;  %v4705_v3 = vld [vmem:[%s6108_s1 + $0x3a8] sm:$0xff]   ;;  %v4712_v10 = vld [vmem:[%s6108_s1 + $0x3f8] sm:$0xff]  }
  0x43   :  { %4179 = vmatpush3.bf16.msra.mxu0 %v4645_v9  ;;  %2890 = vmatprep.mubr.bf16.mxu0 %v4677_v40  ;;  %v4711_v9 = vld [vmem:[%s6108_s1 + $0x338] sm:$0xff]   ;;  %v4744_v40 = vld [vmem:[%s6108_s1 + $0x470] sm:$0xff]  }
  0x44   :  { %2850 = vmatmul.mubr.bf16.vlgmr.msra.gmra.mrb[4].mxu1 %v4642_v7  ;;  %4180 = vmatprep.subr.bf16.mxu0 %v4648_v12  ;;  %v4709_v7 = vld [vmem:[%s6108_s1 + $0x3b0] sm:$0xff]  }
  0x45   :  { %4201 = vmatpush3.bf16.msra.mxu1 %v4647_v11  ;;  %2931 = vmatprep.mubr.bf16.mxu1 %v4682_v44  ;;  %v4713_v11 = vld [vmem:[%s6109_s0 + $0x30] ss:$152 sps:$4 sm:$0xff]   ;;  %v4715_v12 = vld [vmem:[%s6109_s0 + $0x34] ss:$152 sps:$4 sm:$0xff]   ;;  %v4748_v44 = vld [vmem:[%s6108_s1 + $0x478] sm:$0xff]  }
  0x46   :  { %4202 = vmatprep.subr.bf16.mxu1 %v4650_v14  ;;  %v4717_v14 = vld [vmem:[%s6108_s1 + $0x440] sm:$0xff]  }
  0x47   :  { %4181 = vmatpush3.bf16.msra.mxu0 %v4649_v13  ;;  %v4716_v13 = vld [vmem:[%s6108_s1 + $0x3b8] sm:$0xff]  }
  0x48   :  { %4182 = vmatprep.subr.bf16.mxu0 %v4652_v16  ;;  %v4720_v16 = vld [vmem:[%s6109_s0 + $0x3c] ss:$152 sps:$4 sm:$0xff]  }
  0x49   :  { %4203 = vmatpush3.bf16.msra.mxu1 %v4651_v15  ;;  %v4718_v15 = vld [vmem:[%s6109_s0 + $0x38] ss:$152 sps:$4 sm:$0xff]  }
  0x4a   :  { %4204 = vmatprep.subr.bf16.mxu1 %v4654_v18  ;;  %v4722_v18 = vld [vmem:[%s6108_s1 + $0x4c0] sm:$0xff]  }
  0x4b   :  { %4183 = vmatpush3.bf16.msra.mxu0 %v4653_v17  ;;  %v4721_v17 = vld [vmem:[%s6108_s1 + $0x400] sm:$0xff]  }
  0x4c   :  { %4184 = vmatprep.subr.bf16.mxu0 %v4656_v20  ;;  %v4724_v20 = vld [vmem:[%s6108_s1 + $0x448] sm:$0xff]  }
  0x4d   :  { %4205 = vmatpush3.bf16.msra.mxu1 %v4655_v19  ;;  %v4723_v19 = vld [vmem:[%s6108_s1 + $0x480] sm:$0xff]  }
  0x4e   :  { %4206 = vmatprep.subr.bf16.mxu1 %v4658_v22  ;;  %v4726_v22 = vld [vmem:[%s6108_s1 + $0x4c8] sm:$0xff]  }
  0x4f   :  { %4185 = vmatpush3.bf16.msra.mxu0 %v4657_v21  ;;  %v4725_v21 = vld [vmem:[%s6108_s1 + $0x408] sm:$0xff]  }
  0x50   :  { %4186 = vmatprep.subr.bf16.mxu0 %v4660_v24  ;;  %v4728_v24 = vld [vmem:[%s6108_s1 + $0x450] sm:$0xff]  }
  0x51   :  { %4207 = vmatpush3.bf16.msra.mxu1 %v4659_v23  ;;  %v4727_v23 = vld [vmem:[%s6108_s1 + $0x488] sm:$0xff]  }
  0x52   :  { %4208 = vmatprep.subr.bf16.mxu1 %v4662_v26  ;;  %v4730_v26 = vld [vmem:[%s6108_s1 + $0x4d0] sm:$0xff]  }
  0x53   :  { %4187 = vmatpush3.bf16.msra.mxu0 %v4661_v25  ;;  %v4729_v25 = vld [vmem:[%s6108_s1 + $0x410] sm:$0xff]  }
  0x54   :  { %4188 = vmatprep.subr.bf16.mxu0 %v4664_v28  ;;  %v4732_v28 = vld [vmem:[%s6108_s1 + $0x458] sm:$0xff]  }
  0x55   :  { %4209 = vmatpush3.bf16.msra.mxu1 %v4663_v27  ;;  %v4731_v27 = vld [vmem:[%s6108_s1 + $0x490] sm:$0xff]  }
  0x56   :  { %4210 = vmatprep.subr.bf16.mxu1 %v4666_v30  ;;  %v4734_v30 = vld [vmem:[%s6108_s1 + $0x4d8] sm:$0xff]  }
  0x57   :  { %4189 = vmatpush3.bf16.msra.mxu0 %v4665_v29  ;;  %v4733_v29 = vld [vmem:[%s6108_s1 + $0x418] sm:$0xff]  }
  0x58   :  { %4190 = vmatprep.subr.bf16.mxu0 %v4668_v32  ;;  %v4736_v32 = vld [vmem:[%s6108_s1 + $0x460] sm:$0xff]  }
  0x59   :  { %4211 = vmatpush3.bf16.msra.mxu1 %v4667_v31  ;;  %v4735_v31 = vld [vmem:[%s6108_s1 + $0x498] sm:$0xff]  }
  0x5a   :  { %4212 = vmatprep.subr.bf16.mxu1 %v4670_v34  ;;  %v4738_v34 = vld [vmem:[%s6108_s1 + $0x4e0] sm:$0xff]  }
  0x5b   :  { %4191 = vmatpush3.bf16.msra.mxu0 %v4669_v33  ;;  %v4737_v33 = vld [vmem:[%s6108_s1 + $0x420] sm:$0xff]  }
  0x5c   :  { %4192 = vmatprep.subr.bf16.mxu0 %v4672_v36  ;;  %v4740_v36 = vld [vmem:[%s6108_s1 + $0x468] sm:$0xff]  }
  0x5d   :  { %4213 = vmatpush3.bf16.msra.mxu1 %v4671_v35  ;;  %v4739_v35 = vld [vmem:[%s6108_s1 + $0x4a0] sm:$0xff]  }
  0x5e   :  { %4214 = vmatprep.subr.bf16.mxu1 %v4674_v38  ;;  %v4742_v38 = vld [vmem:[%s6108_s1 + $0x4e8] sm:$0xff]  }
  0x5f   :  { %4193 = vmatpush3.bf16.msra.mxu0 %v4673_v37  ;;  %v4741_v37 = vld [vmem:[%s6108_s1 + $0x428] sm:$0xff]  }
  0x60   :  { %4222 = vmatprep.subr.bf16.mxu0 %v4679_v42  ;;  %v4746_v42 = vld [vmem:[%s6108_s1 + $0x4f0] sm:$0xff]  }
  0x61   :  { %4215 = vmatpush3.bf16.msra.mxu1 %v4678_v41  ;;  %v4745_v41 = vld [vmem:[%s6108_s1 + $0x430] sm:$0xff]  }
  0x62   :  { %2891 = vmatmul.mubr.bf16.vlgmr.msra.gmra.mrb[8].mxu0 %v4675_v39  ;;  %4244 = vmatprep.subr.bf16.mxu1 %v4684_v46  ;;  %v4743_v39 = vld [vmem:[%s6108_s1 + $0x4a8] sm:$0xff]   ;;  %v4750_v46 = vld [vmem:[%s6108_s1 + $0x4f8] sm:$0xff]  }
  0x63   :  { %4223 = vmatpush3.bf16.msra.mxu0 %v4683_v45  ;;  %2972 = vmatprep.mubr.bf16.mxu0 %v4715_v12  ;;  %v4749_v45 = vld [vmem:[%s6108_s1 + $0x438] sm:$0xff]   ;;  %v4782_v12 = vld [vmem:[%s6108_s1 + $0x570] sm:$0xff]  }
  0x64   :  { %2932 = vmatmul.mubr.bf16.vlgmr.msra.gmra.mrb[8].mxu1 %v4680_v43  ;;  %4224 = vmatprep.subr.bf16.mxu0 %v4686_v48  ;;  %v4747_v43 = vld [vmem:[%s6108_s1 + $0x4b0] sm:$0xff]   ;;  %v4753_v48 = vld [vmem:[%s6109_s0 + $0x44] ss:$152 sps:$4 sm:$0xff]  }
  0x65   :  { %4245 = vmatpush3.bf16.msra.mxu1 %v4685_v47  ;;  %3013 = vmatprep.mubr.bf16.mxu1 %v4720_v16  ;;  %v4751_v47 = vld [vmem:[%s6109_s0 + $0x40] ss:$152 sps:$4 sm:$0xff]  }
  0x66   :  { %4246 = vmatprep.subr.bf16.mxu1 %v4688_v50  ;;  %v4755_v50 = vld [vmem:[%s6108_s1 + $0x540] sm:$0xff]   ;;  %v4786_v16 = vld [vmem:[%s6108_s1 + $0x578] sm:$0xff]  }
  0x67   :  { %4225 = vmatpush3.bf16.msra.mxu0 %v4687_v49  ;;  %v4754_v49 = vld [vmem:[%s6108_s1 + $0x4b8] sm:$0xff]  }
  0x68   :  { %4226 = vmatprep.subr.bf16.mxu0 %v4690_v52  ;;  %v4758_v52 = vld [vmem:[%s6109_s0 + $0x4c] ss:$152 sps:$4 sm:$0xff]  }
  0x69   :  { %4247 = vmatpush3.bf16.msra.mxu1 %v4689_v51  ;;  %v4756_v51 = vld [vmem:[%s6109_s0 + $0x48] ss:$152 sps:$4 sm:$0xff]  }
  0x6a   :  { %4248 = vmatprep.subr.bf16.mxu1 %v4692_v54  ;;  %v4760_v54 = vld [vmem:[%s6108_s1 + $0x5c0] sm:$0xff]  }
  0x6b   :  { %4227 = vmatpush3.bf16.msra.mxu0 %v4691_v53  ;;  %v4759_v53 = vld [vmem:[%s6108_s1 + $0x500] sm:$0xff]  }
  0x6c   :  { %4228 = vmatprep.subr.bf16.mxu0 %v4694_v56  ;;  %v4762_v56 = vld [vmem:[%s6108_s1 + $0x548] sm:$0xff]  }
  0x6d   :  { %4249 = vmatpush3.bf16.msra.mxu1 %v4693_v55  ;;  %v4761_v55 = vld [vmem:[%s6108_s1 + $0x580] sm:$0xff]  }
  0x6e   :  { %4250 = vmatprep.subr.bf16.mxu1 %v4696_v58  ;;  %v4764_v58 = vld [vmem:[%s6108_s1 + $0x5c8] sm:$0xff]  }
  0x6f   :  { %4229 = vmatpush3.bf16.msra.mxu0 %v4695_v57  ;;  %v4763_v57 = vld [vmem:[%s6108_s1 + $0x508] sm:$0xff]  }
  0x70   :  { %4230 = vmatprep.subr.bf16.mxu0 %v4698_v60  ;;  %v4766_v60 = vld [vmem:[%s6108_s1 + $0x550] sm:$0xff]  }
  0x71   :  { %4251 = vmatpush3.bf16.msra.mxu1 %v4697_v59  ;;  %v4765_v59 = vld [vmem:[%s6108_s1 + $0x588] sm:$0xff]  }
  0x72   :  { %4252 = vmatprep.subr.bf16.mxu1 %v4700_v62  ;;  %v4768_v62 = vld [vmem:[%s6108_s1 + $0x5d0] sm:$0xff]  }
  0x73   :  { %4231 = vmatpush3.bf16.msra.mxu0 %v4699_v61  ;;  %v4767_v61 = vld [vmem:[%s6108_s1 + $0x510] sm:$0xff]  }
  0x74   :  { %4232 = vmatprep.subr.bf16.mxu0 %v4702_v0  ;;  %v4770_v0 = vld [vmem:[%s6108_s1 + $0x558] sm:$0xff]  }
  0x75   :  { %4253 = vmatpush3.bf16.msra.mxu1 %v4701_v63  ;;  %v4769_v63 = vld [vmem:[%s6108_s1 + $0x590] sm:$0xff]  }
  0x76   :  { %4254 = vmatprep.subr.bf16.mxu1 %v4704_v2  ;;  %v4772_v2 = vld [vmem:[%s6108_s1 + $0x5d8] sm:$0xff]  }
  0x77   :  { %4233 = vmatpush3.bf16.msra.mxu0 %v4703_v1  ;;  %v4771_v1 = vld [vmem:[%s6108_s1 + $0x518] sm:$0xff]  }
  0x78   :  { %4234 = vmatprep.subr.bf16.mxu0 %v4706_v4  ;;  %v4774_v4 = vld [vmem:[%s6108_s1 + $0x560] sm:$0xff]  }
  0x79   :  { %4255 = vmatpush3.bf16.msra.mxu1 %v4705_v3  ;;  %v4773_v3 = vld [vmem:[%s6108_s1 + $0x598] sm:$0xff]  }
  0x7a   :  { %4256 = vmatprep.subr.bf16.mxu1 %v4708_v6  ;;  %v4776_v6 = vld [vmem:[%s6108_s1 + $0x5e0] sm:$0xff]  }
  0x7b   :  { %4235 = vmatpush3.bf16.msra.mxu0 %v4707_v5  ;;  %v4775_v5 = vld [vmem:[%s6108_s1 + $0x520] sm:$0xff]  }
  0x7c   :  { %4236 = vmatprep.subr.bf16.mxu0 %v4710_v8  ;;  %v4778_v8 = vld [vmem:[%s6108_s1 + $0x568] sm:$0xff]  }
  0x7d   :  { %4257 = vmatpush3.bf16.msra.mxu1 %v4709_v7  ;;  %v4777_v7 = vld [vmem:[%s6108_s1 + $0x5a0] sm:$0xff]  }
  0x7e   :  { %4258 = vmatprep.subr.bf16.mxu1 %v4712_v10  ;;  %v4780_v10 = vld [vmem:[%s6108_s1 + $0x5e8] sm:$0xff]  }
  0x7f   :  { %4237 = vmatpush3.bf16.msra.mxu0 %v4711_v9  ;;  %v4779_v9 = vld [vmem:[%s6108_s1 + $0x528] sm:$0xff]  }
  0x80   :  { %4266 = vmatprep.subr.bf16.mxu0 %v4717_v14  ;;  %v4784_v14 = vld [vmem:[%s6108_s1 + $0x5f0] sm:$0xff]  }
  0x81   :  { %4259 = vmatpush3.bf16.msra.mxu1 %v4716_v13  ;;  %v4783_v13 = vld [vmem:[%s6108_s1 + $0x530] sm:$0xff]  }
  0x82   :  { %2973 = vmatmul.mubr.bf16.vlgmr.msra.gmra.mrb[12].mxu0 %v4713_v11  ;;  %4288 = vmatprep.subr.bf16.mxu1 %v4722_v18  ;;  %v4781_v11 = vld [vmem:[%s6108_s1 + $0x5a8] sm:$0xff]   ;;  %v4788_v18 = vld [vmem:[%s6108_s1 + $0x5f8] sm:$0xff]  }
  0x83   :  { %4267 = vmatpush3.bf16.msra.mxu0 %v4721_v17  ;;  %3054 = vmatprep.mubr.bf16.mxu0 %v4753_v48  ;;  %v4787_v17 = vld [vmem:[%s6108_s1 + $0x538] sm:$0xff]   ;;  %v4820_v48 = vld [vmem:[%s6108_s1 + $0x670] sm:$0xff]  }
  0x84   :  { %3014 = vmatmul.mubr.bf16.vlgmr.msra.gmra.mrb[12].mxu1 %v4718_v15  ;;  %4268 = vmatprep.subr.bf16.mxu0 %v4724_v20  ;;  %v4785_v15 = vld [vmem:[%s6108_s1 + $0x5b0] sm:$0xff]  }
  0x85   :  { %4289 = vmatpush3.bf16.msra.mxu1 %v4723_v19  ;;  %3095 = vmatprep.mubr.bf16.mxu1 %v4758_v52  ;;  %v4789_v19 = vld [vmem:[%s6109_s0 + $0x50] ss:$152 sps:$4 sm:$0xff]   ;;  %v4791_v20 = vld [vmem:[%s6109_s0 + $0x54] ss:$152 sps:$4 sm:$0xff]   ;;  %v4824_v52 = vld [vmem:[%s6108_s1 + $0x678] sm:$0xff]  }
  0x86   :  { %4290 = vmatprep.subr.bf16.mxu1 %v4726_v22  ;;  %v4793_v22 = vld [vmem:[%s6108_s1 + $0x640] sm:$0xff]  }
  0x87   :  { %4269 = vmatpush3.bf16.msra.mxu0 %v4725_v21  ;;  %v4792_v21 = vld [vmem:[%s6108_s1 + $0x5b8] sm:$0xff]  }
  0x88   :  { %4270 = vmatprep.subr.bf16.mxu0 %v4728_v24  ;;  %v4796_v24 = vld [vmem:[%s6109_s0 + $0x5c] ss:$152 sps:$4 sm:$0xff]  }
  0x89   :  { %4291 = vmatpush3.bf16.msra.mxu1 %v4727_v23  ;;  %v4794_v23 = vld [vmem:[%s6109_s0 + $0x58] ss:$152 sps:$4 sm:$0xff]  }
  0x8a   :  { %4292 = vmatprep.subr.bf16.mxu1 %v4730_v26  ;;  %v4798_v26 = vld [vmem:[%s6108_s1 + $0x6c0] sm:$0xff]  }
  0x8b   :  { %4271 = vmatpush3.bf16.msra.mxu0 %v4729_v25  ;;  %v4797_v25 = vld [vmem:[%s6108_s1 + $0x600] sm:$0xff]  }
  0x8c   :  { %4272 = vmatprep.subr.bf16.mxu0 %v4732_v28  ;;  %v4800_v28 = vld [vmem:[%s6108_s1 + $0x648] sm:$0xff]  }
  0x8d   :  { %4293 = vmatpush3.bf16.msra.mxu1 %v4731_v27  ;;  %v4799_v27 = vld [vmem:[%s6108_s1 + $0x680] sm:$0xff]  }
  0x8e   :  { %4294 = vmatprep.subr.bf16.mxu1 %v4734_v30  ;;  %v4802_v30 = vld [vmem:[%s6108_s1 + $0x6c8] sm:$0xff]  }
  0x8f   :  { %4273 = vmatpush3.bf16.msra.mxu0 %v4733_v29  ;;  %v4801_v29 = vld [vmem:[%s6108_s1 + $0x608] sm:$0xff]  }
  0x90   :  { %4274 = vmatprep.subr.bf16.mxu0 %v4736_v32  ;;  %v4804_v32 = vld [vmem:[%s6108_s1 + $0x650] sm:$0xff]  }
  0x91   :  { %4295 = vmatpush3.bf16.msra.mxu1 %v4735_v31  ;;  %v4803_v31 = vld [vmem:[%s6108_s1 + $0x688] sm:$0xff]  }
  0x92   :  { %4296 = vmatprep.subr.bf16.mxu1 %v4738_v34  ;;  %v4806_v34 = vld [vmem:[%s6108_s1 + $0x6d0] sm:$0xff]  }
  0x93   :  { %4275 = vmatpush3.bf16.msra.mxu0 %v4737_v33  ;;  %v4805_v33 = vld [vmem:[%s6108_s1 + $0x610] sm:$0xff]  }
  0x94   :  { %4276 = vmatprep.subr.bf16.mxu0 %v4740_v36  ;;  %v4808_v36 = vld [vmem:[%s6108_s1 + $0x658] sm:$0xff]  }
  0x95   :  { %4297 = vmatpush3.bf16.msra.mxu1 %v4739_v35  ;;  %v4807_v35 = vld [vmem:[%s6108_s1 + $0x690] sm:$0xff]  }
  0x96   :  { %4298 = vmatprep.subr.bf16.mxu1 %v4742_v38  ;;  %v4810_v38 = vld [vmem:[%s6108_s1 + $0x6d8] sm:$0xff]  }
  0x97   :  { %4277 = vmatpush3.bf16.msra.mxu0 %v4741_v37  ;;  %v4809_v37 = vld [vmem:[%s6108_s1 + $0x618] sm:$0xff]  }
  0x98   :  { %4278 = vmatprep.subr.bf16.mxu0 %v4744_v40  ;;  %v4812_v40 = vld [vmem:[%s6108_s1 + $0x660] sm:$0xff]  }
  0x99   :  { %4299 = vmatpush3.bf16.msra.mxu1 %v4743_v39  ;;  %v4811_v39 = vld [vmem:[%s6108_s1 + $0x698] sm:$0xff]  }
  0x9a   :  { %4300 = vmatprep.subr.bf16.mxu1 %v4746_v42  ;;  %v4814_v42 = vld [vmem:[%s6108_s1 + $0x6e0] sm:$0xff]  }
  0x9b   :  { %4279 = vmatpush3.bf16.msra.mxu0 %v4745_v41  ;;  %v4813_v41 = vld [vmem:[%s6108_s1 + $0x620] sm:$0xff]  }
  0x9c   :  { %4280 = vmatprep.subr.bf16.mxu0 %v4748_v44  ;;  %v4816_v44 = vld [vmem:[%s6108_s1 + $0x668] sm:$0xff]  }
  0x9d   :  { %4301 = vmatpush3.bf16.msra.mxu1 %v4747_v43  ;;  %v4815_v43 = vld [vmem:[%s6108_s1 + $0x6a0] sm:$0xff]  }
  0x9e   :  { %4302 = vmatprep.subr.bf16.mxu1 %v4750_v46  ;;  %v4818_v46 = vld [vmem:[%s6108_s1 + $0x6e8] sm:$0xff]  }
  0x9f   :  { %4281 = vmatpush3.bf16.msra.mxu0 %v4749_v45  ;;  %v4817_v45 = vld [vmem:[%s6108_s1 + $0x628] sm:$0xff]  }
  0xa0   :  { %4310 = vmatprep.subr.bf16.mxu0 %v4755_v50  ;;  %v4822_v50 = vld [vmem:[%s6108_s1 + $0x6f0] sm:$0xff]  }
  0xa1   :  { %4303 = vmatpush3.bf16.msra.mxu1 %v4754_v49  ;;  %v4821_v49 = vld [vmem:[%s6108_s1 + $0x630] sm:$0xff]  }
  0xa2   :  { %3055 = vmatmul.mubr.bf16.vlgmr.msra.gmra.mrb[16].mxu0 %v4751_v47  ;;  %4332 = vmatprep.subr.bf16.mxu1 %v4760_v54  ;;  %v4819_v47 = vld [vmem:[%s6108_s1 + $0x6a8] sm:$0xff]   ;;  %v4826_v54 = vld [vmem:[%s6108_s1 + $0x6f8] sm:$0xff]  }
  0xa3   :  { %4311 = vmatpush3.bf16.msra.mxu0 %v4759_v53  ;;  %3136 = vmatprep.mubr.bf16.mxu0 %v4791_v20  ;;  %v4825_v53 = vld [vmem:[%s6108_s1 + $0x638] sm:$0xff]  }
  0xa4   :  { %3096 = vmatmul.mubr.bf16.vlgmr.msra.gmra.mrb[16].mxu1 %v4756_v51  ;;  %4312 = vmatprep.subr.bf16.mxu0 %v4762_v56  ;;  %v4823_v51 = vld [vmem:[%s6108_s1 + $0x6b0] sm:$0xff]   ;;  %v4829_v56 = vld [vmem:[%s6109_s0 + $0x64] ss:$152 sps:$4 sm:$0xff]  }
  0xa5   :  { %4333 = vmatpush3.bf16.msra.mxu1 %v4761_v55  ;;  %3177 = vmatprep.mubr.bf16.mxu1 %v4796_v24  ;;  %v4827_v55 = vld [vmem:[%s6109_s0 + $0x60] ss:$152 sps:$4 sm:$0xff]  }
  0xa6   :  { %4334 = vmatprep.subr.bf16.mxu1 %v4764_v58  ;;  %v4831_v58 = vld [vmem:[%s6108_s1 + $0x740] sm:$0xff]   ;;  %v4846_v20 = vld [vmem:[%s6108_s1 + $0x758] sm:$0xff]  }
  0xa7   :  { %4313 = vmatpush3.bf16.msra.mxu0 %v4763_v57  ;;  %v4830_v57 = vld [vmem:[%s6108_s1 + $0x6b8] sm:$0xff]   ;;  %v4850_v24 = vld [vmem:[%s6108_s1 + $0x760] sm:$0xff]  }
  0xa8   :  { %4314 = vmatprep.subr.bf16.mxu0 %v4766_v60  ;;  %v4834_v60 = vld [vmem:[%s6109_s0 + $0x6c] ss:$152 sps:$4 sm:$0xff]  }
  0xa9   :  { %4335 = vmatpush3.bf16.msra.mxu1 %v4765_v59  ;;  %v4832_v59 = vld [vmem:[%s6109_s0 + $0x68] ss:$152 sps:$4 sm:$0xff]  }
  0xaa   :  { %4336 = vmatprep.subr.bf16.mxu1 %v4768_v62  ;;  %v4836_v62 = vld [vmem:[%s6108_s1 + $0x7c0] sm:$0xff]  }
  0xab   :  { %4315 = vmatpush3.bf16.msra.mxu0 %v4767_v61  ;;  %v4835_v61 = vld [vmem:[%s6108_s1 + $0x700] sm:$0xff]  }
  0xac   :  { %4316 = vmatprep.subr.bf16.mxu0 %v4770_v0 }
  0xad   :  { %4337 = vmatpush3.bf16.msra.mxu1 %v4769_v63  ;;  %v4837_v63 = vld [vmem:[%s6108_s1 + $0x780] sm:$0xff]  }
  0xae   :  { %4338 = vmatprep.subr.bf16.mxu1 %v4772_v2 }
  0xaf   :  { %4317 = vmatpush3.bf16.msra.mxu0 %v4771_v1  ;;  %v4838_v1 = vld [vmem:[%s6108_s1 + $0x748] sm:$0xff]  }
  0xb0   :  { %4318 = vmatprep.subr.bf16.mxu0 %v4774_v4 }
  0xb1   :  { %4339 = vmatpush3.bf16.msra.mxu1 %v4773_v3  ;;  %v4839_v3 = vld [vmem:[%s6108_s1 + $0x708] sm:$0xff]  }
  0xb2   :  { %4340 = vmatprep.subr.bf16.mxu1 %v4776_v6  ;;  %v4840_v6 = vld [vmem:[%s6108_s1 + $0x7c8] sm:$0xff]  }
  0xb3   :  { %4319 = vmatpush3.bf16.msra.mxu0 %v4775_v5 }
  0xb4   :  { %4320 = vmatprep.subr.bf16.mxu0 %v4778_v8  ;;  %v4841_v8 = vld [vmem:[%s6108_s1 + $0x788] sm:$0xff]  }
  0xb5   :  { %4341 = vmatpush3.bf16.msra.mxu1 %v4777_v7 }
  0xb6   :  { %4342 = vmatprep.subr.bf16.mxu1 %v4780_v10  ;;  %v4842_v10 = vld [vmem:[%s6108_s1 + $0x750] sm:$0xff]  }
  0xb7   :  { %4321 = vmatpush3.bf16.msra.mxu0 %v4779_v9 }
  0xb8   :  { %4322 = vmatprep.subr.bf16.mxu0 %v4782_v12 }
  0xb9   :  { %4343 = vmatpush3.bf16.msra.mxu1 %v4781_v11 }
  0xba   :  { %4344 = vmatprep.subr.bf16.mxu1 %v4784_v14 }
  0xbb   :  { %4323 = vmatpush3.bf16.msra.mxu0 %v4783_v13  ;;  %v4843_v13 = vld [vmem:[%s6108_s1 + $0x710] sm:$0xff]  }
  0xbc   :  { %4324 = vmatprep.subr.bf16.mxu0 %v4786_v16  ;;  %v4844_v16 = vld [vmem:[%s6108_s1 + $0x7d0] sm:$0xff]  }
  0xbd   :  { %4345 = vmatpush3.bf16.msra.mxu1 %v4785_v15 }
  0xbe   :  { %4346 = vmatprep.subr.bf16.mxu1 %v4788_v18  ;;  %v4845_v18 = vld [vmem:[%s6108_s1 + $0x790] sm:$0xff]  }
  0xbf   :  { %4325 = vmatpush3.bf16.msra.mxu0 %v4787_v17 }
  0xc0   :  { %4354 = vmatprep.subr.bf16.mxu0 %v4793_v22  ;;  %v4848_v22 = vld [vmem:[%s6108_s1 + $0x7d8] sm:$0xff]  }
  0xc1   :  { %4347 = vmatpush3.bf16.msra.mxu1 %v4792_v21  ;;  %v4847_v21 = vld [vmem:[%s6108_s1 + $0x718] sm:$0xff]  }
  0xc2   :  { %3137 = vmatmul.mubr.bf16.vlgmr.msra.gmra.mrb[20].mxu0 %v4789_v19  ;;  %4376 = vmatprep.subr.bf16.mxu1 %v4798_v26  ;;  %v4852_v26 = vld [vmem:[%s6108_s1 + $0x7e0] sm:$0xff]  }
  0xc3   :  { %4355 = vmatpush3.bf16.msra.mxu0 %v4797_v25  ;;  %3218 = vmatprep.mubr.bf16.mxu0 %v4829_v56  ;;  %v4851_v25 = vld [vmem:[%s6108_s1 + $0x720] sm:$0xff]  }
  0xc4   :  { %3178 = vmatmul.mubr.bf16.vlgmr.msra.gmra.mrb[20].mxu1 %v4794_v23  ;;  %4356 = vmatprep.subr.bf16.mxu0 %v4800_v28  ;;  %v4849_v23 = vld [vmem:[%s6108_s1 + $0x798] sm:$0xff]   ;;  %v3729_v28 = vld [vmem:[%s6110_s2] ss:$0 sm:$0xff] }
  0xc5   :  { %4377 = vmatpush3.bf16.msra.mxu1 %v4799_v27  ;;  %3259 = vmatprep.mubr.bf16.mxu1 %v4834_v60  ;;  %v4853_v27 = vld [vmem:[%s6108_s1 + $0x7a0] sm:$0xff]   ;;  %v4878_v60 = vld [vmem:[%s6108_s1 + $0x8c8] sm:$0xff]  }
  0xc6   :  { %4378 = vmatprep.subr.bf16.mxu1 %v4802_v30  ;;  %v4854_v30 = vld [vmem:[%s6108_s1 + $0x768] sm:$0xff]  }
  0xc7   :  { %4357 = vmatpush3.bf16.msra.mxu0 %v4801_v29 }
  0xc8   :  { %4358 = vmatprep.subr.bf16.mxu0 %v4804_v32  ;;  %v4855_v32 = vld [vmem:[%s6108_s1 + $0x728] sm:$0xff]  }
  0xc9   :  { %4379 = vmatpush3.bf16.msra.mxu1 %v4803_v31 }
  0xca   :  { %4380 = vmatprep.subr.bf16.mxu1 %v4806_v34  ;;  %v4856_v34 = vld [vmem:[%s6108_s1 + $0x7e8] sm:$0xff]  }
  0xcb   :  { %4359 = vmatpush3.bf16.msra.mxu0 %v4805_v33 }
  0xcc   :  { %4360 = vmatprep.subr.bf16.mxu0 %v4808_v36  ;;  %v4857_v36 = vld [vmem:[%s6108_s1 + $0x7a8] sm:$0xff]  }
  0xcd   :  { %4381 = vmatpush3.bf16.msra.mxu1 %v4807_v35 }
  0xce   :  { %4382 = vmatprep.subr.bf16.mxu1 %v4810_v38  ;;  %v4859_v38 = vld [vmem:[%s6108_s1 + $0x730] sm:$0xff]  }
  0xcf   :  { %4361 = vmatpush3.bf16.msra.mxu0 %v4809_v37  ;;  %v4858_v37 = vld [vmem:[%s6108_s1 + $0x770] sm:$0xff]  }
  0xd0   :  { %4362 = vmatprep.subr.bf16.mxu0 %v4812_v40  ;;  %v4861_v40 = vld [vmem:[%s6108_s1 + $0x7b0] sm:$0xff]  }
  0xd1   :  { %4383 = vmatpush3.bf16.msra.mxu1 %v4811_v39  ;;  %v4860_v39 = vld [vmem:[%s6108_s1 + $0x7f0] sm:$0xff]  }
  0xd2   :  { %4384 = vmatprep.subr.bf16.mxu1 %v4814_v42  ;;  %v4863_v42 = vld [vmem:[%s6108_s1 + $0x738] sm:$0xff]  }
  0xd3   :  { %4363 = vmatpush3.bf16.msra.mxu0 %v4813_v41  ;;  %v4862_v41 = vld [vmem:[%s6108_s1 + $0x778] sm:$0xff]  }
  0xd4   :  { %4364 = vmatprep.subr.bf16.mxu0 %v4816_v44  ;;  %v4865_v44 = vld [vmem:[%s6109_s0 + $0x70] ss:$152 sps:$4 sm:$0xff]  }
  0xd5   :  { %4385 = vmatpush3.bf16.msra.mxu1 %v4815_v43  ;;  %v4864_v43 = vld [vmem:[%s6108_s1 + $0x7f8] sm:$0xff]  }
  0xd6   :  { %4386 = vmatprep.subr.bf16.mxu1 %v4818_v46  ;;  %v4868_v46 = vld [vmem:[%s6108_s1 + $0x7b8] sm:$0xff]  }
  0xd7   :  { %4365 = vmatpush3.bf16.msra.mxu0 %v4817_v45  ;;  %v4867_v45 = vld [vmem:[%s6109_s0 + $0x74] ss:$152 sps:$4 sm:$0xff]  }
  0xd8   :  { %4366 = vmatprep.subr.bf16.mxu0 %v4820_v48  ;;  %v4870_v48 = vld [vmem:[%s6109_s0 + $0x78] ss:$152 sps:$4 sm:$0xff]  }
  0xd9   :  { %4387 = vmatpush3.bf16.msra.mxu1 %v4819_v47  ;;  %v4869_v47 = vld [vmem:[%s6108_s1 + $0x840] sm:$0xff]  }
  0xda   :  { %4388 = vmatprep.subr.bf16.mxu1 %v4822_v50  ;;  %v4873_v50 = vld [vmem:[%s6108_s1 + $0x800] sm:$0xff]  }
  0xdb   :  { %4367 = vmatpush3.bf16.msra.mxu0 %v4821_v49  ;;  %v4872_v49 = vld [vmem:[%s6109_s0 + $0x7c] ss:$152 sps:$4 sm:$0xff]  }
  0xdc   :  { %4368 = vmatprep.subr.bf16.mxu0 %v4824_v52 }
  0xdd   :  { %4389 = vmatpush3.bf16.msra.mxu1 %v4823_v51  ;;  %v4874_v51 = vld [vmem:[%s6108_s1 + $0x8c0] sm:$0xff]  }
  0xde   :  { %4390 = vmatprep.subr.bf16.mxu1 %v4826_v54 }
  0xdf   :  { %4369 = vmatpush3.bf16.msra.mxu0 %v4825_v53  ;;  %v4875_v53 = vld [vmem:[%s6108_s1 + $0x880] sm:$0xff]  }
  0xe0   :  { %4398 = vmatprep.subr.bf16.mxu0 %v4831_v58  ;;  %v4877_v58 = vld [vmem:[%s6108_s1 + $0x808] sm:$0xff]  }
  0xe1   :  { %4391 = vmatpush3.bf16.msra.mxu1 %v4830_v57 }
  0xe2   :  { %3219 = vmatmul.mubr.bf16.vlgmr.msra.gmra.mrb[24].mxu0 %v4827_v55  ;;  %4420 = vmatprep.subr.bf16.mxu1 %v4836_v62  ;;  %v4876_v55 = vld [vmem:[%s6108_s1 + $0x848] sm:$0xff]  }
  0xe3   :  { %4399 = vmatpush3.bf16.msra.mxu0 %v4835_v61  ;;  %3300 = vmatprep.mubr.bf16.mxu0 %v4867_v45 }
  0xe4   :  { %3260 = vmatmul.mubr.bf16.vlgmr.msra.gmra.mrb[24].mxu1 %v4832_v59  ;;  %4400 = vmatprep.subr.bf16.mxu0 %v4838_v1 }
  0xe5   :  { %4421 = vmatpush3.bf16.msra.mxu1 %v4837_v63  ;;  %3341 = vmatprep.mubr.bf16.mxu1 %v4872_v49  ;;  %v4915_v49 = vld [vmem:[%s6108_s1 + $0x910] sm:$0xff]  }
  0xe6   :  { %4422 = vmatprep.subr.bf16.mxu1 %v4840_v6  ;;  %v4881_v6 = vld [vmem:[%s6108_s1 + $0x810] sm:$0xff]  }
  0xe7   :  { %4401 = vmatpush3.bf16.msra.mxu0 %v4839_v3 }
  0xe8   :  { %4402 = vmatprep.subr.bf16.mxu0 %v4842_v10 }
  0xe9   :  { %4423 = vmatpush3.bf16.msra.mxu1 %v4841_v8  ;;  %v4882_v8 = vld [vmem:[%s6108_s1 + $0x8d0] sm:$0xff]  }
  0xea   :  { %4424 = vmatprep.subr.bf16.mxu1 %v4844_v16  ;;  %v4887_v16 = vld [vmem:[%s6108_s1 + $0x898] sm:$0xff]  }
  0xeb   :  { %4403 = vmatpush3.bf16.msra.mxu0 %v4843_v13 }
  0xec   :  { %4404 = vmatprep.subr.bf16.mxu0 %v4846_v20  ;;  %v4891_v20 = vld [vmem:[%s6108_s1 + $0x8a0] sm:$0xff]  }
  0xed   :  { %4425 = vmatpush3.bf16.msra.mxu1 %v4845_v18  ;;  %v4889_v18 = vld [vmem:[%s6108_s1 + $0x820] sm:$0xff]  }
  0xee   :  { %4426 = vmatprep.subr.bf16.mxu1 %v4848_v22  ;;  %v4893_v22 = vld [vmem:[%s6108_s1 + $0x828] sm:$0xff]  }
  0xef   :  { %4405 = vmatpush3.bf16.msra.mxu0 %v4847_v21  ;;  %v4892_v21 = vld [vmem:[%s6108_s1 + $0x868] sm:$0xff]  }
  0xf0   :  { %4406 = vmatprep.subr.bf16.mxu0 %v4850_v24  ;;  %v4895_v24 = vld [vmem:[%s6108_s1 + $0x8a8] sm:$0xff]  }
  0xf1   :  { %4427 = vmatpush3.bf16.msra.mxu1 %v4849_v23  ;;  %v4894_v23 = vld [vmem:[%s6108_s1 + $0x8e8] sm:$0xff]  }
  0xf2   :  { %4428 = vmatprep.subr.bf16.mxu1 %v4852_v26  ;;  %v4897_v26 = vld [vmem:[%s6108_s1 + $0x830] sm:$0xff]  }
  0xf3   :  { %4407 = vmatpush3.bf16.msra.mxu0 %v4851_v25  ;;  %v4896_v25 = vld [vmem:[%s6108_s1 + $0x870] sm:$0xff]  }
  0xf4   :  { %4408 = vmatprep.subr.bf16.mxu0 %v4854_v30  ;;  %v4901_v30 = vld [vmem:[%s6108_s1 + $0x838] sm:$0xff]  }
  0xf5   :  { %v4106_v0 = vpop.f32.mrb[0].mxu0  ;;  %4429 = vmatpush3.bf16.msra.mxu1 %v4853_v27  ;;  %v4898_v27 = vld [vmem:[%s6108_s1 + $0x8f0] sm:$0xff]  }
  0xf6   :  { %v4107_v2 = vpop.f32.mrb[1].mxu0  ;;  %4430 = vmatprep.subr.bf16.mxu1 %v4856_v34  ;;  %v4906_v34 = vld [vmem:[%s6108_s1 + $0x8b8] sm:$0xff]  }
  0xf7   :  { %v4108_v4 = vadd.f32 %v4107_v2, %v4106_v0  ;;  %v4109_v5 = vpop.f32.mrb[2].mxu0  ;;  %v4128_v7 = vpop.f32.mrb[0].mxu1  ;;  %4409 = vmatpush3.bf16.msra.mxu0 %v4855_v32  ;;  %v4879_v0 = vld [vmem:[%s6108_s1 + $0x888] sm:$0xff]   ;;  %v4880_v2 = vld [vmem:[%s6108_s1 + $0x850] sm:$0xff]   ;;  %v4903_v32 = vld [vmem:[%s6109_s0 + $0x80] ss:$152 sps:$4 sm:$0xff]  }
  0xf8   :  { %v4110_v9 = vpop.f32.mrb[3].mxu0  ;;  %v4129_v12 = vpop.f32.mrb[1].mxu1  ;;  %4410 = vmatprep.subr.bf16.mxu0 %v4858_v37  ;;  %v4910_v37 = vld [vmem:[%s6109_s0 + $0x8c] ss:$152 sps:$4 sm:$0xff]  }
  0xf9   :  { %v4111_v11 = vadd.f32 %v4110_v9, %v4109_v5  ;;  %v4130_v14 = vadd.f32 %v4129_v12, %v4128_v7  ;;  %v4131_v15 = vpop.f32.mrb[2].mxu1  ;;  %v2729_v29 = vadd.f32 %v4108_v4, %v3729_v28  ;;  %4431 = vmatpush3.bf16.msra.mxu1 %v4857_v36  ;;  %v4884_v12 = vld [vmem:[%s6108_s1 + $0x858] sm:$0xff]   ;;  %v4908_v36 = vld [vmem:[%s6109_s0 + $0x88] ss:$152 sps:$4 sm:$0xff]  }
  0xfa   :  { %v4132_v17 = vpop.f32.mrb[3].mxu1  ;;  %4432 = vmatprep.subr.bf16.mxu1 %v4860_v39  ;;  %v4912_v39 = vld [vmem:[%s6108_s1 + $0x948] sm:$0xff]  }
  0xfb   :  { %v4133_v19 = vadd.f32 %v4132_v17, %v4131_v15  ;;  %v2732_v31 = vadd.f32 %v4111_v11, %v3729_v28  ;;  %v2770_v33 = vadd.f32 %v4130_v14, %v2729_v29  ;;  %4411 = vmatpush3.bf16.msra.mxu0 %v4859_v38  ;;  %v4883_v11 = vld [vmem:[%s6108_s1 + $0x890] sm:$0xff]   ;;  %v4885_v14 = vld [vmem:[%s6108_s1 + $0x818] sm:$0xff]   ;;  %v4888_v17 = vld [vmem:[%s6108_s1 + $0x860] sm:$0xff]  }
  0xfc   :  { %4412 = vmatprep.subr.bf16.mxu0 %v4862_v41  ;;  %v4886_v15 = vld [vmem:[%s6108_s1 + $0x8d8] sm:$0xff]   ;;  %v4899_v28 = vld [vmem:[%s6108_s1 + $0x8b0] sm:$0xff]   ;;  %v4911_v38 = vld [vmem:[%s6108_s1 + $0x900] sm:$0xff]  }
  0xfd   :  { %v2773_v35 = vadd.f32 %v4133_v19, %v2732_v31  ;;  %4433 = vmatpush3.bf16.msra.mxu1 %v4861_v40  ;;  %v4890_v19 = vld [vmem:[%s6108_s1 + $0x8e0] sm:$0xff]   ;;  %v4900_v29 = vld [vmem:[%s6108_s1 + $0x878] sm:$0xff]   ;;  %v4913_v41 = vld [vmem:[%s6108_s1 + $0x908] sm:$0xff]  }
  0xfe   :  { %4434 = vmatprep.subr.bf16.mxu1 %v4864_v43  ;;  %v4902_v31 = vld [vmem:[%s6108_s1 + $0x8f8] sm:$0xff]   ;;  %v4914_v43 = vld [vmem:[%s6108_s1 + $0x950] sm:$0xff]  }
  0xff   :  { %4413 = vmatpush3.bf16.msra.mxu0 %v4863_v42 }
 0x100   :  { %4442 = vmatprep.subr.bf16.mxu0 %v4869_v47 }
 0x101   :  { %4435 = vmatpush3.bf16.msra.mxu1 %v4868_v46 }
 0x102   :  { %3301 = vmatmul.mubr.bf16.vlgmr.msra.gmra.mrb[28].mxu0 %v4865_v44  ;;  %4464 = vmatprep.subr.bf16.mxu1 %v4874_v51 }
 0x103   :  { %4443 = vmatpush3.bf16.msra.mxu0 %v4873_v50 }
 0x104   :  { %3342 = vmatmul.mubr.bf16.vlgmr.msra.gmra.mrb[28].mxu1 %v4870_v48  ;;  %4444 = vmatprep.subr.bf16.mxu0 %v4876_v55 }
 0x105   :  { %4465 = vmatpush3.bf16.msra.mxu1 %v4875_v53  ;;  %3423 = vmatprep.mubr.bf16.mxu1 %v4910_v37 }
 0x106   :  { %4466 = vmatprep.subr.bf16.mxu1 %v4878_v60  ;;  %v4918_v60 = vld [vmem:[%s6108_s1 + $0x960] sm:$0xff]  }
 0x107   :  { %4445 = vmatpush3.bf16.msra.mxu0 %v4877_v58 }
 0x108   :  { %4446 = vmatprep.subr.bf16.mxu0 %v4880_v2  ;;  %v4922_v2 = vld [vmem:[%s6108_s1 + $0x970] sm:$0xff]  }
 0x109   :  { %4467 = vmatpush3.bf16.msra.mxu1 %v4879_v0  ;;  %v4928_v0 = vld [vmem:[%s6109_s0 + $0x94] ss:$152 sps:$4 sm:$0xff]  }
 0x10a   :  { %4468 = vmatprep.subr.bf16.mxu1 %v4882_v8 }
 0x10b   :  { %4447 = vmatpush3.bf16.msra.mxu0 %v4881_v6  ;;  %v4926_v6 = vld [vmem:[%s6109_s0 + $0x90] ss:$152 sps:$4 sm:$0xff]  }
 0x10c   :  { %4448 = vmatprep.subr.bf16.mxu0 %v4884_v12 }
 0x10d   :  { %4469 = vmatpush3.bf16.msra.mxu1 %v4883_v11 }
 0x10e   :  { %4470 = vmatprep.subr.bf16.mxu1 %v4886_v15 }
 0x10f   :  { %4449 = vmatpush3.bf16.msra.mxu0 %v4885_v14 }
 0x110   :  { %4450 = vmatprep.subr.bf16.mxu0 %v4888_v17 }
 0x111   :  { %4471 = vmatpush3.bf16.msra.mxu1 %v4887_v16 }
 0x112   :  { %4472 = vmatprep.subr.bf16.mxu1 %v4890_v19 }
 0x113   :  { %4451 = vmatpush3.bf16.msra.mxu0 %v4889_v18 }
 0x114   :  { %4452 = vmatprep.subr.bf16.mxu0 %v4892_v21 }
 0x115   :  { %v4150_v52 = vpop.f32.mrb[4].mxu0  ;;  %4473 = vmatpush3.bf16.msra.mxu1 %v4891_v20 }
 0x116   :  { %v4151_v54 = vpop.f32.mrb[5].mxu0  ;;  %4474 = vmatprep.subr.bf16.mxu1 %v4894_v23 }
 0x117   :  { %v4152_v56 = vadd.f32 %v4151_v54, %v4150_v52  ;;  %v4153_v57 = vpop.f32.mrb[6].mxu0  ;;  %v4172_v62 = vpop.f32.mrb[4].mxu1  ;;  %4453 = vmatpush3.bf16.msra.mxu0 %v4893_v22  ;;  %v4916_v52 = vld [vmem:[%s6108_s1 + $0x958] sm:$0xff]  }
 0x118   :  { %v4154_v59 = vpop.f32.mrb[7].mxu0  ;;  %v4173_v1 = vpop.f32.mrb[5].mxu1  ;;  %4454 = vmatprep.subr.bf16.mxu0 %v4896_v25 }
 0x119   :  { %v2811_v61 = vadd.f32 %v4152_v56, %v2770_v33  ;;  %v4155_v63 = vadd.f32 %v4154_v59, %v4153_v57  ;;  %v4174_v4 = vadd.f32 %v4173_v1, %v4172_v62  ;;  %v4175_v5 = vpop.f32.mrb[6].mxu1  ;;  %4475 = vmatpush3.bf16.msra.mxu1 %v4895_v24  ;;  %v4905_v33 = vld [vmem:[%s6109_s0 + $0x84] ss:$152 sps:$4 sm:$0xff]   ;;  %v4921_v1 = vld [vmem:[%s6108_s1 + $0x928] sm:$0xff]  }
 0x11a   :  { %v4176_v7 = vpop.f32.mrb[7].mxu1  ;;  %4476 = vmatprep.subr.bf16.mxu1 %v4898_v27  ;;  %3382 = vmatprep.mubr.bf16.mxu0 %v4905_v33  ;;  %v4917_v59 = vld [vmem:[%s6108_s1 + $0x918] sm:$0xff]   ;;  %v4919_v62 = vld [vmem:[%s6108_s1 + $0x920] sm:$0xff]  }
 0x11b   :  { %v2814_v3 = vadd.f32 %v4155_v63, %v2773_v35  ;;  %v5895_v9 = vadd.f32 %v4174_v4, %v2811_v61  ;;  %v4177_v10 = vadd.f32 %v4176_v7, %v4175_v5  ;;  %4455 = vmatpush3.bf16.msra.mxu0 %v4897_v26  ;;  %v4907_v35 = vld [vmem:[%s6108_s1 + $0x940] sm:$0xff]   ;;  %v4920_v63 = vld [vmem:[%s6108_s1 + $0x968] sm:$0xff]   ;;  %v4924_v4 = vld [vmem:[%s6108_s1 + $0x978] sm:$0xff]  }
 0x11c   :  { %4456 = vmatprep.subr.bf16.mxu0 %v4900_v29  ;;  %v4925_v5 = vld [vmem:[%s6108_s1 + $0x938] sm:$0xff]  }
 0x11d   :  { %v5903_v13 = vadd.f32 %v4177_v10, %v2814_v3  ;;  %4477 = vmatpush3.bf16.msra.mxu1 %v4899_v28  ;;  %v4923_v3 = vld [vmem:[%s6108_s1 + $0x930] sm:$0xff]  }
 0x11e   :  { %4478 = vmatprep.subr.bf16.mxu1 %v4902_v31 }
 0x11f   :  { %4457 = vmatpush3.bf16.msra.mxu0 %v4901_v30 }
 0x120   :  { %4486 = vmatprep.subr.bf16.mxu0 %v4907_v35 }
 0x121   :  { %4479 = vmatpush3.bf16.msra.mxu1 %v4906_v34 }
 0x122   :  { %3383 = vmatmul.mubr.bf16.vlgmr.msra.gmra.mrb[32].mxu0 %v4903_v32 }
 0x123   :  { %4487 = vmatpush3.bf16.msra.mxu0 %v4911_v38  ;;  %3464 = vmatprep.mubr.bf16.mxu0 %v4928_v0  ;;  %v4937_v0 = vld [vmem:[%s6112_s5] sm:$0xff]  }
 0x124   :  { %3424 = vmatmul.mubr.bf16.vlgmr.msra.gmra.mrb[32].mxu1 %v4908_v36  ;;  %4488 = vmatprep.subr.bf16.mxu0 %v4912_v39  ;;  %v4953_v39 = vmov 0.0  }
 0x125   :  { %4526 = vmatprep.subr.bf16.mxu1 %v4953_v39  ;;  %4542 = vmatprep.mubr.msk.bf16.mxu1 %vm4954_vm0, %v4953_v39 }
 0x127   :  { %4489 = vmatpush3.bf16.msra.mxu0 %v4913_v41  ;;  %v4930_v41 = vld [vmem:[%s6111_s3 + $0x8] sm:$0xff]  }
 0x128   :  { %4490 = vmatprep.subr.bf16.mxu0 %v4914_v43  ;;  %v4932_v43 = vld [vmem:[%s6111_s3 + $0x18] sm:$0xff]  }
 0x12b   :  { %4491 = vmatpush3.bf16.msra.mxu0 %v4915_v49 }
 0x12c   :  { %4492 = vmatprep.subr.bf16.mxu0 %v4916_v52 }
 0x12f   :  { %4493 = vmatpush3.bf16.msra.mxu0 %v4917_v59 }
 0x130   :  { %4494 = vmatprep.subr.bf16.mxu0 %v4918_v60 }
 0x133   :  { %4495 = vmatpush3.bf16.msra.mxu0 %v4919_v62  ;;  %v4935_v62 = vld [vmem:[%s6111_s3 + $0x30] sm:$0xff]  }
 0x134   :  { %4496 = vmatprep.subr.bf16.mxu0 %v4920_v63  ;;  %v4936_v63 = vld [vmem:[%s6111_s3 + $0x38] sm:$0xff]  }
 0x135   :  { %v4194_v40 = vpop.f32.mrb[8].mxu0 }
 0x136   :  { %v4195_v42 = vpop.f32.mrb[9].mxu0 }
 0x137   :  { %v4196_v44 = vadd.f32 %v4195_v42, %v4194_v40  ;;  %v4197_v45 = vpop.f32.mrb[10].mxu0  ;;  %v4216_v46 = vpop.f32.mrb[8].mxu1  ;;  %4497 = vmatpush3.bf16.msra.mxu0 %v4921_v1  ;;  %v4929_v40 = vld [vmem:[%s6111_s3] sm:$0xff]   ;;  %v4931_v42 = vld [vmem:[%s6111_s3 + $0x10] sm:$0xff]   ;;  %v4938_v1 = vld [vmem:[%s6112_s5 + $0x8] sm:$0xff]  }
 0x138   :  { %v4198_v48 = vpop.f32.mrb[11].mxu0  ;;  %v4217_v51 = vpop.f32.mrb[9].mxu1  ;;  %4498 = vmatprep.subr.bf16.mxu0 %v4922_v2  ;;  %4527 = vmatpush3.bf16.msra.mxu1 %v4929_v40  ;;  %v4939_v2 = vld [vmem:[%s6112_s5 + $0x10] sm:$0xff]  }
 0x139   :  { %v2893_v47 = vadd.f32 %v4196_v44, %v5895_v9  ;;  %v4199_v50 = vadd.f32 %v4198_v48, %v4197_v45  ;;  %v4218_v53 = vadd.f32 %v4217_v51, %v4216_v46  ;;  %v4219_v54 = vpop.f32.mrb[10].mxu1  ;;  %4528 = vmatprep.subr.bf16.mxu1 %v4953_v39  ;;  %v4933_v46 = vld [vmem:[%s6111_s3 + $0x20] sm:$0xff]  }
 0x13a   :  { %v4220_v56 = vpop.f32.mrb[11].mxu1 }
 0x13b   :  { %v2896_v55 = vadd.f32 %v4199_v50, %v5903_v13  ;;  %v2934_v57 = vadd.f32 %v4218_v53, %v2893_v47  ;;  %v4221_v58 = vadd.f32 %v4220_v56, %v4219_v54  ;;  %4499 = vmatpush3.bf16.msra.mxu0 %v4923_v3  ;;  %v4940_v3 = vld [vmem:[%s6112_s5 + $0x18] sm:$0xff]  }
 0x13c   :  { %4500 = vmatprep.subr.bf16.mxu0 %v4924_v4  ;;  %4529 = vmatpush3.bf16.msra.mxu1 %v4930_v41 }
 0x13d   :  { %v2937_v61 = vadd.f32 %v4221_v58, %v2896_v55  ;;  %4530 = vmatprep.subr.bf16.mxu1 %v4953_v39 }
 0x13f   :  { %4501 = vmatpush3.bf16.msra.mxu0 %v4925_v5 }
 0x140   :  { %4546 = vmatprep.subr.bf16.mxu0 %v4953_v39  ;;  %4531 = vmatpush3.bf16.msra.mxu1 %v4931_v42 }
 0x141   :  { %4532 = vmatprep.subr.bf16.mxu1 %v4953_v39 }
 0x142   :  { %3465 = vmatmul.mubr.bf16.vlgmr.msra.gmra.mrb[36].mxu0 %v4926_v6 }
 0x143   :  { %4562 = vmatprep.mubr.msk.bf16.mxu0 %vm4954_vm0, %v4953_v39  ;;  %4547 = vmatpush3.bf16.msra.mxu0 %v4937_v0 }
 0x144   :  { %4533 = vmatpush3.bf16.msra.mxu1 %v4932_v43  ;;  %4548 = vmatprep.subr.bf16.mxu0 %v4953_v39 }
 0x145   :  { %4534 = vmatprep.subr.bf16.mxu1 %v4953_v39 }
 0x147   :  { %4549 = vmatpush3.bf16.msra.mxu0 %v4938_v1 }
 0x148   :  { %4535 = vmatpush3.bf16.msra.mxu1 %v4933_v46  ;;  %4550 = vmatprep.subr.bf16.mxu0 %v4953_v39 }
 0x149   :  { %4536 = vmatprep.subr.bf16.mxu1 %v4953_v39 }
 0x14b   :  { %4551 = vmatpush3.bf16.msra.mxu0 %v4939_v2  ;;  %v4943_v2 = vld [vmem:[%s6112_s5 + $0x30] sm:$0xff]  }
 0x14c   :  { %4552 = vmatprep.subr.bf16.mxu0 %v4953_v39 }
 0x14f   :  { %4553 = vmatpush3.bf16.msra.mxu0 %v4940_v3  ;;  %v4944_v3 = vld [vmem:[%s6112_s5 + $0x38] sm:$0xff]  }
 0x150   :  { %4554 = vmatprep.subr.bf16.mxu0 %v4953_v39 }
 0x155   :  { %v4238_v7 = vpop.f32.mrb[12].mxu0 }
 0x156   :  { %v4239_v8 = vpop.f32.mrb[13].mxu0 }
 0x157   :  { %v4240_v9 = vadd.f32 %v4239_v8, %v4238_v7  ;;  %v4241_v10 = vpop.f32.mrb[14].mxu0  ;;  %v4260_v11 = vpop.f32.mrb[12].mxu1 }
 0x158   :  { %v4242_v12 = vpop.f32.mrb[15].mxu0  ;;  %v4261_v15 = vpop.f32.mrb[13].mxu1 }
 0x159   :  { %v2975_v13 = vadd.f32 %v4240_v9, %v2934_v57  ;;  %v4243_v14 = vadd.f32 %v4242_v12, %v4241_v10  ;;  %v4262_v16 = vadd.f32 %v4261_v15, %v4260_v11  ;;  %v4263_v17 = vpop.f32.mrb[14].mxu1  ;;  %v4941_v10 = vld [vmem:[%s6112_s5 + $0x20] sm:$0xff]  }
 0x15a   :  { %v4264_v19 = vpop.f32.mrb[15].mxu1  ;;  %4555 = vmatpush3.bf16.msra.mxu0 %v4941_v10 }
 0x15b   :  { %v2978_v18 = vadd.f32 %v4243_v14, %v2937_v61  ;;  %v3016_v20 = vadd.f32 %v4262_v16, %v2975_v13  ;;  %v4265_v21 = vadd.f32 %v4264_v19, %v4263_v17  ;;  %v4934_v61 = vld [vmem:[%s6111_s3 + $0x28] sm:$0xff]   ;;  %4556 = vmatprep.subr.bf16.mxu0 %v4953_v39 }
 0x15c   :  { %4537 = vmatpush3.bf16.msra.mxu1 %v4934_v61 }
 0x15d   :  { %v3019_v22 = vadd.f32 %v4265_v21, %v2978_v18  ;;  %4538 = vmatprep.subr.bf16.mxu1 %v4953_v39 }
 0x160   :  { %4539 = vmatpush3.bf16.msra.mxu1 %v4935_v62 }
 0x161   :  { %4540 = vmatprep.subr.bf16.mxu1 %v4953_v39 }
 0x164   :  { %4541 = vmatpush3.bf16.msra.mxu1 %v4936_v63 }
 0x175   :  { %v4282_v23 = vpop.f32.mrb[16].mxu0 }
 0x176   :  { %v4283_v24 = vpop.f32.mrb[17].mxu0 }
 0x177   :  { %v4284_v25 = vadd.f32 %v4283_v24, %v4282_v23  ;;  %v4285_v26 = vpop.f32.mrb[18].mxu0  ;;  %v4304_v29 = vpop.f32.mrb[16].mxu1 }
 0x178   :  { %v4286_v27 = vpop.f32.mrb[19].mxu0  ;;  %v4305_v31 = vpop.f32.mrb[17].mxu1 }
 0x179   :  { %v3057_v28 = vadd.f32 %v4284_v25, %v3016_v20  ;;  %v4287_v30 = vadd.f32 %v4286_v27, %v4285_v26  ;;  %v4306_v33 = vadd.f32 %v4305_v31, %v4304_v29  ;;  %v4307_v34 = vpop.f32.mrb[18].mxu1  ;;  %v4942_v20 = vld [vmem:[%s6112_s5 + $0x28] sm:$0xff]  }
 0x17a   :  { %v4308_v35 = vpop.f32.mrb[19].mxu1  ;;  %4557 = vmatpush3.bf16.msra.mxu0 %v4942_v20 }
 0x17b   :  { %v3060_v32 = vadd.f32 %v4287_v30, %v3019_v22  ;;  %v3098_v36 = vadd.f32 %v4306_v33, %v3057_v28  ;;  %v4309_v37 = vadd.f32 %v4308_v35, %v4307_v34  ;;  %4558 = vmatprep.subr.bf16.mxu0 %v4953_v39 }
 0x17d   :  { %v3101_v38 = vadd.f32 %v4309_v37, %v3060_v32 }
 0x17e   :  { %4559 = vmatpush3.bf16.msra.mxu0 %v4943_v2 }
 0x17f   :  { %4560 = vmatprep.subr.bf16.mxu0 %v4953_v39  ;;  %v4081_v39 = vld [vmem:[%s6114_s6] ss:$0 sm:$0xff] }
 0x182   :  { %4561 = vmatpush3.bf16.msra.mxu0 %v4944_v3 }
 0x195   :  { %v4326_v44 = vpop.f32.mrb[20].mxu0 }
 0x196   :  { %v4327_v45 = vpop.f32.mrb[21].mxu0 }
 0x197   :  { %v4328_v47 = vadd.f32 %v4327_v45, %v4326_v44  ;;  %v4329_v48 = vpop.f32.mrb[22].mxu0  ;;  %v4348_v49 = vpop.f32.mrb[20].mxu1 }
 0x198   :  { %v4330_v50 = vpop.f32.mrb[23].mxu0  ;;  %v4349_v53 = vpop.f32.mrb[21].mxu1 }
 0x199   :  { %v3139_v51 = vadd.f32 %v4328_v47, %v3098_v36  ;;  %v4331_v52 = vadd.f32 %v4330_v50, %v4329_v48  ;;  %v4350_v54 = vadd.f32 %v4349_v53, %v4348_v49  ;;  %v4351_v55 = vpop.f32.mrb[22].mxu1 }
 0x19a   :  { %v4352_v57 = vpop.f32.mrb[23].mxu1 }
 0x19b   :  { %v3142_v56 = vadd.f32 %v4331_v52, %v3101_v38  ;;  %v3180_v58 = vadd.f32 %v4350_v54, %v3139_v51  ;;  %v4353_v59 = vadd.f32 %v4352_v57, %v4351_v55 }
 0x19d   :  { %v3183_v60 = vadd.f32 %v4353_v59, %v3142_v56 }
 0x1b5   :  { %v4370_v4 = vpop.f32.mrb[24].mxu0 }
 0x1b6   :  { %v4371_v5 = vpop.f32.mrb[25].mxu0 }
 0x1b7   :  { %v4372_v6 = vadd.f32 %v4371_v5, %v4370_v4  ;;  %v4373_v7 = vpop.f32.mrb[26].mxu0  ;;  %v4392_v8 = vpop.f32.mrb[24].mxu1  ;;  %v4072_v4 = vld [vmem:[%s6113_s4] ss:$0 sm:$0xff] }
 0x1b8   :  { %v4374_v9 = vpop.f32.mrb[27].mxu0  ;;  %v4393_v13 = vpop.f32.mrb[25].mxu1 }
 0x1b9   :  { %v3221_v11 = vadd.f32 %v4372_v6, %v3180_v58  ;;  %v4375_v12 = vadd.f32 %v4374_v9, %v4373_v7  ;;  %v4394_v14 = vadd.f32 %v4393_v13, %v4392_v8  ;;  %v4395_v15 = vpop.f32.mrb[26].mxu1 }
 0x1ba   :  { %v4396_v17 = vpop.f32.mrb[27].mxu1 }
 0x1bb   :  { %v3224_v16 = vadd.f32 %v4375_v12, %v3183_v60  ;;  %v3262_v18 = vadd.f32 %v4394_v14, %v3221_v11  ;;  %v4397_v19 = vadd.f32 %v4396_v17, %v4395_v15 }
 0x1bd   :  { %v3265_v21 = vadd.f32 %v4397_v19, %v3224_v16 }
 0x1d5   :  { %v4414_v22 = vpop.f32.mrb[28].mxu0 }
 0x1d6   :  { %v4415_v23 = vpop.f32.mrb[29].mxu0 }
 0x1d7   :  { %v4416_v24 = vadd.f32 %v4415_v23, %v4414_v22  ;;  %v4417_v25 = vpop.f32.mrb[30].mxu0  ;;  %v4436_v26 = vpop.f32.mrb[28].mxu1 }
 0x1d8   :  { %v4418_v27 = vpop.f32.mrb[31].mxu0  ;;  %v4437_v30 = vpop.f32.mrb[29].mxu1 }
 0x1d9   :  { %v3303_v28 = vadd.f32 %v4416_v24, %v3262_v18  ;;  %v4419_v29 = vadd.f32 %v4418_v27, %v4417_v25  ;;  %v4438_v31 = vadd.f32 %v4437_v30, %v4436_v26  ;;  %v4439_v32 = vpop.f32.mrb[30].mxu1 }
 0x1da   :  { %v4440_v34 = vpop.f32.mrb[31].mxu1 }
 0x1db   :  { %v3306_v33 = vadd.f32 %v4419_v29, %v3265_v21  ;;  %v3344_v35 = vadd.f32 %v4438_v31, %v3303_v28  ;;  %v4441_v36 = vadd.f32 %v4440_v34, %v4439_v32 }
 0x1dd   :  { %v3347_v37 = vadd.f32 %v4441_v36, %v3306_v33 }
 0x1f5   :  { %v4458_v38 = vpop.f32.mrb[32].mxu0 }
 0x1f6   :  { %v4459_v40 = vpop.f32.mrb[33].mxu0 }
 0x1f7   :  { %v4460_v41 = vadd.f32 %v4459_v40, %v4458_v38  ;;  %v4461_v42 = vpop.f32.mrb[34].mxu0  ;;  %v4480_v45 = vpop.f32.mrb[32].mxu1 }
 0x1f8   :  { %v4462_v43 = vpop.f32.mrb[35].mxu0  ;;  %v4481_v47 = vpop.f32.mrb[33].mxu1 }
 0x1f9   :  { %v3385_v44 = vadd.f32 %v4460_v41, %v3344_v35  ;;  %v4463_v46 = vadd.f32 %v4462_v43, %v4461_v42  ;;  %v4482_v49 = vadd.f32 %v4481_v47, %v4480_v45  ;;  %v4483_v50 = vpop.f32.mrb[34].mxu1 }
 0x1fa   :  { %v4484_v51 = vpop.f32.mrb[35].mxu1 }
 0x1fb   :  { %v3388_v48 = vadd.f32 %v4463_v46, %v3347_v37  ;;  %v3426_v52 = vadd.f32 %v4482_v49, %v3385_v44  ;;  %v4485_v53 = vadd.f32 %v4484_v51, %v4483_v50 }
 0x1fd   :  { %v3429_v54 = vadd.f32 %v4485_v53, %v3388_v48 }
 0x215   :  { %v4502_v55 = vpop.f32.mrb[36].mxu0 }
 0x216   :  { %v4503_v56 = vpop.f32.mrb[37].mxu0 }
 0x217   :  { %v4504_v57 = vadd.f32 %v4503_v56, %v4502_v55  ;;  %v4505_v58 = vpop.f32.mrb[38].mxu0 }
 0x218   :  { %v4506_v59 = vpop.f32.mrb[39].mxu0 }
 0x219   :  { %v3467_v60 = vadd.f32 %v4504_v57, %v3426_v52  ;;  %v4507_v61 = vadd.f32 %v4506_v59, %v4505_v58 }
 0x21b   :  { %v3470_v62 = vadd.f32 %v4507_v61, %v3429_v54  ;;  %v3473_v63 = vmax.f32 %v3467_v60, 0.0 }
 0x21d   :  { %v3474_v0 = vmax.f32 %v3470_v62, 0.0 }
 0x21f   :  { %v3475_v1 = vpack.c.bf16 %v3474_v0, %v3473_v63 }
 0x221   :  { %4543 = vmatmul.mubr.bf16.vlgmr.msra.gmra.mrb[36].mxu1 %v3475_v1 }
 0x2f4   :  { %v3581_v5 = vpop.f32.mrb[36].mxu1 }
 0x2f5   :  { %v3582_v6 = vadd.f32 %v4072_v4, %v3581_v5  ;;  %v4544_v7 = vpop.f32.mrb[37].mxu1 }
 0x2f6   :  { %v3584_v8 = vpop.f32.mrb[38].mxu1 }
 0x2f7   :  { %v3585_v9 = vadd.f32 %v4072_v4, %v3584_v8  ;;  %v4545_v10 = vpop.f32.mrb[39].mxu1  ;;  %v3588_v11 = vmax.f32 %v3582_v6, 0.0 }
 0x2f9   :  { %v3589_v12 = vmax.f32 %v3585_v9, 0.0 }
 0x2fb   :  { %v3590_v13 = vpack.c.bf16 %v3589_v12, %v3588_v11 }
 0x2fd   :  { %4563 = vmatmul.mubr.bf16.vlgmr.msra.gmra.mrb[40].mxu0 %v3590_v13 }
 0x3d0   :  { %v3696_v14 = vpop.f32.mrb[40].mxu0 }
 0x3d1   :  { %v3697_v15 = vadd.f32 %v4081_v39, %v3696_v14  ;;  %v4564_v16 = vpop.f32.mrb[41].mxu0 }
 0x3d2   :  { %v3699_v17 = vpop.f32.mrb[42].mxu0 }
 0x3d3   :  { %3703 = vmax.xlane.f32.xlu0 %v3697_v15  ;;  %v4565_v18 = vpop.f32.mrb[43].mxu0  ;;  %v3700_v19 = vadd.f32 %v4081_v39, %v3699_v17 }
 0x3d7   :  { %3705 = vmax.xlane.f32.xlu0 %v3700_v19 }
 0x460   :  { %v3704_v20 = vpop.xlane.xlu0 %3703 }
 0x461   :  { %v3707_v21 = vsub.f32 %v3697_v15, %v3704_v20 }
 0x463   :  { %v3709_v22 = vmul.f32 1.442695, %v3707_v21 }
 0x464   :  { %v3706_v23 = vpop.xlane.xlu0 %3705 }
 0x465   :  { %v3708_v24 = vsub.f32 %v3700_v19, %v3706_v23  ;;  %4945 = vpow2.f32 %v3709_v22 }
 0x467   :  { %v3711_v25 = vmul.f32 1.442695, %v3708_v24 }
 0x469   :  { %4947 = vpow2.f32 %v3711_v25 }
 0x46f   :  { %v4946_v26 = vpop.eup %4945 }
 0x470   :  { %3713 = vadd.xlane.f32.xlu1 %v4946_v26 }
 0x473   :  { %v4948_v27 = vpop.eup %4947 }
 0x474   :  { %3715 = vadd.xlane.f32.xlu1 %v4948_v27 }
 0x4fd   :  { %v3714_v28 = vpop.xlane.xlu1 %3713 }
 0x4fe   :  { %4949 = vlog2.f32 %v3714_v28 }
 0x501   :  { %v3716_v29 = vpop.xlane.xlu1 %3715 }
 0x502   :  { %4951 = vlog2.f32 %v3716_v29 }
 0x508   :  { %v4950_v30 = vpop.eup %4949 }
 0x509   :  { %v3718_v31 = vmul.f32 0.6931472, %v4950_v30 }
 0x50b   :  { %v3721_v32 = vsub.f32 %v3707_v21, %v3718_v31 }
 0x50c   :  { %v4952_v33 = vpop.eup %4951 }
 0x50d   :  { %3723 = vst [vmem:[%s6115_s7] sm:$0xff] %v3721_v32  ;;  %v3720_v34 = vmul.f32 0.6931472, %v4952_v33 }
 0x50f   :  { %v3722_v35 = vsub.f32 %v3708_v24, %v3720_v34 }
 0x511   :  { %3724 = vst [vmem:[%s6115_s7 + $0x8] sm:$0xff] %v3722_v35 }

</bundles_post_ra>
